<compile_context>
chip_gen: v5e
topology: v5e:2x2
jax: 0.10.0
libtpu: 0.0.40
codegen_flags: <defaults>
</compile_context>

<pallas_src>
import functools

import jax
import jax.numpy as jnp
from jax.experimental import pallas as pl
from jax.experimental.pallas import tpu as pltpu


def _combined_kernel(img_ref, meta_ref,
                     w1_ref, b1_ref,
                     w2_ref, b2_ref,
                     w3i_ref, w3m_ref, b3_ref,
                     gamma_ref, beta_ref,
                     out_ref, *, eps: float):
    # compute dtype for the MXU operands (bf16 fast path or f32 exact path)
    cdt = w1_ref.dtype

    # --- img branch: Linear + ReLU (f32 accumulate) -------------------------
    img_p = jnp.dot(img_ref[...].astype(cdt), w1_ref[...],
                    preferred_element_type=jnp.float32) + b1_ref[...]
    img_p = jnp.maximum(img_p, 0.0)

    # --- metadata branch: Linear + ReLU (f32 accumulate) --------------------
    meta_p = jnp.dot(meta_ref[...].astype(cdt), w2_ref[...],
                     preferred_element_type=jnp.float32) + b2_ref[...]
    meta_p = jnp.maximum(meta_p, 0.0)

    # --- combiner Linear (concat fused via split weight) --------------------
    comb = (jnp.dot(img_p.astype(cdt), w3i_ref[...],
                    preferred_element_type=jnp.float32)
            + jnp.dot(meta_p.astype(cdt), w3m_ref[...],
                      preferred_element_type=jnp.float32)
            + b3_ref[...])

    # --- LayerNorm over the last dim (elementwise affine), all in f32 -------
    mean = jnp.mean(comb, axis=-1, keepdims=True)
    centered = comb - mean
    var = jnp.mean(centered * centered, axis=-1, keepdims=True)
    normed = centered * jax.lax.rsqrt(var + eps)
    out_ref[...] = (normed * gamma_ref[...] + beta_ref[...]).astype(out_ref.dtype)


def combined_vector_processor(img_embedding, metadata_embedding, params, *,
                              block_b: int = 256,      # use 128 on v5e
                              eps: float = 1e-5,
                              compute_dtype=jnp.bfloat16,
                              single_buffer_weights: bool = True):
    """Pallas implementation of CombinedVectorProcessor.forward.

    img_embedding:      [B, img_dim]       float32
    metadata_embedding: [B, metadata_dim]  float32
    returns:            [B, output_dim]    float32
    """
    B, img_dim = img_embedding.shape
    B2, meta_dim = metadata_embedding.shape
    assert B == B2
    out_dim = params["b3"].shape[-1]

    # --- batch tiling: big tiles for the MXU; pad ragged batches ------------
    block_b = max(1, min(block_b, B))
    pad = (-B) % block_b
    if pad:
        img_embedding = jnp.pad(img_embedding, ((0, pad), (0, 0)))
        metadata_embedding = jnp.pad(metadata_embedding, ((0, pad), (0, 0)))
    b_padded = B + pad
    grid = (b_padded // block_b,)

    # --- parameters: weights in MXU-native compute dtype, affine terms f32 --
    f32 = jnp.float32
    w1 = params["w1"].astype(compute_dtype)            # [img_dim, img_dim]
    w2 = params["w2"].astype(compute_dtype)            # [meta_dim, meta_dim]
    w3 = params["w3"].astype(compute_dtype)            # [img+meta, out_dim]
    w3_img = w3[:img_dim]                               # [img_dim, out_dim]
    w3_meta = w3[img_dim:]                              # [meta_dim, out_dim]
    b1 = params["b1"].astype(f32).reshape(1, -1)
    b2 = params["b2"].astype(f32).reshape(1, -1)
    b3 = params["b3"].astype(f32).reshape(1, -1)
    gamma = params["gamma"].astype(f32).reshape(1, -1)
    beta = params["beta"].astype(f32).reshape(1, -1)

    consts = (w1, b1, w2, b2, w3_img, w3_meta, b3, gamma, beta)
    kernel = functools.partial(_combined_kernel, eps=eps)

    def _nbytes(a):
        return a.size * jnp.dtype(a.dtype).itemsize

    def _run(weight_pipeline_mode):
        def row_spec(d):
            return pl.BlockSpec((block_b, d), lambda i: (i, 0))

        def const_spec(arr):
            if weight_pipeline_mode is None:
                return pl.BlockSpec(arr.shape, lambda i: (0, 0))
            return pl.BlockSpec(arr.shape, lambda i: (0, 0),
                                pipeline_mode=weight_pipeline_mode)

        # VMEM budget: double-buffered activation/output tiles (f32) plus the
        # constant operands (single- or double-buffered), with 2x headroom,
        # clamped to stay portable to v7x's smaller VMEM.
        weight_bufs = 1 if weight_pipeline_mode is not None else 2
        act_bytes = 2 * block_b * (img_dim + meta_dim + out_dim) * 4
        const_bytes = weight_bufs * sum(_nbytes(a) for a in consts)
        vmem_limit = int(min(100 << 20, max(32 << 20, 2 * (act_bytes + const_bytes))))

        return pl.pallas_call(
            kernel,
            out_shape=jax.ShapeDtypeStruct((b_padded, out_dim), jnp.float32),
            grid_spec=pltpu.PrefetchScalarGridSpec(
                num_scalar_prefetch=0,
                grid=grid,
                in_specs=[
                    row_spec(img_dim),        # img_embedding tile
                    row_spec(meta_dim),       # metadata_embedding tile
                    const_spec(w1),           # w1
                    const_spec(b1),           # b1
                    const_spec(w2),           # w2
                    const_spec(b2),           # b2
                    const_spec(w3_img),       # w3 (img rows)
                    const_spec(w3_meta),      # w3 (metadata rows)
                    const_spec(b3),           # b3
                    const_spec(gamma),        # layernorm gamma
                    const_spec(beta),         # layernorm beta
                ],
                out_specs=pl.BlockSpec((block_b, out_dim), lambda i: (i, 0)),
            ),
            compiler_params=pltpu.CompilerParams(
                dimension_semantics=("parallel",),   # shards batch over v7x's 2 TCs
                vmem_limit_bytes=vmem_limit),
        )(img_embedding, metadata_embedding, *consts)

    if single_buffer_weights:
        try:
            out = _run(pl.Buffered(1))
        except Exception:
            # Fallback if this jax build rejects buffer_count=1 for pallas_call
            # pipelining; constant-index inputs are not re-DMA'd per step anyway.
            out = _run(None)
    else:
        out = _run(None)

    return out[:B] if pad else out


def init_params(key, img_dim, meta_dim, out_dim):
    """Deterministic synthetic parameters (shapes match the PyTorch module)."""
    ks = jax.random.split(key, 6)
    scale = 0.02
    return {
        # stored as [in, out] so the kernel does x @ W
        "w1": scale * jax.random.normal(ks[0], (img_dim, img_dim), jnp.float32),
        "b1": scale * jax.random.normal(ks[1], (img_dim,), jnp.float32),
        "w2": scale * jax.random.normal(ks[2], (meta_dim, meta_dim), jnp.float32),
        "b2": scale * jax.random.normal(ks[3], (meta_dim,), jnp.float32),
        "w3": scale * jax.random.normal(ks[4], (img_dim + meta_dim, out_dim), jnp.float32),
        "b3": scale * jax.random.normal(ks[5], (out_dim,), jnp.float32),
        "gamma": jnp.ones((out_dim,), jnp.float32),
        "beta": jnp.zeros((out_dim,), jnp.float32),
    }


def reference_forward(img, meta, params, eps=1e-5):
    """Pure-JAX reference mirroring the PyTorch forward (f32)."""
    img_p = jnp.maximum(img @ params["w1"] + params["b1"], 0.0)
    meta_p = jnp.maximum(meta @ params["w2"] + params["b2"], 0.0)
    comb = jnp.concatenate([img_p, meta_p], axis=-1) @ params["w3"] + params["b3"]
    mu = comb.mean(-1, keepdims=True)
    var = ((comb - mu) ** 2).mean(-1, keepdims=True)
    return (comb - mu) / jnp.sqrt(var + eps) * params["gamma"] + params["beta"]


if __name__ == "__main__":
    # Small shapes consistent with the module (img_dim : metadata_dim = 2 : 1).
    B, IMG_DIM, META_DIM, OUT_DIM = 8, 256, 128, 256

    key = jax.random.PRNGKey(0)
    k_img, k_meta, k_params = jax.random.split(key, 3)

    img = jax.random.normal(k_img, (B, IMG_DIM), jnp.float32)
    meta = jax.random.normal(k_meta, (B, META_DIM), jnp.float32)
    params = init_params(k_params, IMG_DIM, META_DIM, OUT_DIM)

    ref = reference_forward(img, meta, params)

    # Exact-semantics path (f32 weights) — strict check against the module math.
    out_f32 = combined_vector_processor(img, meta, params,
                                        compute_dtype=jnp.float32)
    out_f32 = jax.block_until_ready(out_f32)
    assert out_f32.shape == (B, OUT_DIM)
    assert jnp.allclose(out_f32, ref, atol=1e-4, rtol=1e-4), \
        float(jnp.abs(out_f32 - ref).max())

    # Default fast path (bf16 weights/operands, f32 accumulation + LayerNorm).
    out_bf16 = combined_vector_processor(img, meta, params)
    out_bf16 = jax.block_until_ready(out_bf16)
    assert out_bf16.shape == (B, OUT_DIM)
    assert jnp.allclose(out_bf16, ref, atol=5e-2, rtol=5e-2), \
        float(jnp.abs(out_bf16 - ref).max())

    print("KERNEL_OK")
</pallas_src>

<mosaic_0001>
module attributes {stable_mosaic.version = 11 : i64} {
  func.func @_combined_kernel(%arg0: i32, %arg1: memref<8x256xf32, #tpu.memory_space<vmem>>, %arg2: memref<8x128xf32, #tpu.memory_space<vmem>>, %arg3: memref<256x256xf32, #tpu.memory_space<vmem>>, %arg4: memref<1x256xf32, #tpu.memory_space<vmem>>, %arg5: memref<128x128xf32, #tpu.memory_space<vmem>>, %arg6: memref<1x128xf32, #tpu.memory_space<vmem>>, %arg7: memref<256x256xf32, #tpu.memory_space<vmem>>, %arg8: memref<128x256xf32, #tpu.memory_space<vmem>>, %arg9: memref<1x256xf32, #tpu.memory_space<vmem>>, %arg10: memref<1x256xf32, #tpu.memory_space<vmem>>, %arg11: memref<1x256xf32, #tpu.memory_space<vmem>>, %arg12: memref<8x256xf32, #tpu.memory_space<vmem>>) attributes {dimension_semantics = [#tpu.dimension_semantics<parallel>], iteration_bounds = array<i64: 1>, scalar_prefetch = 0 : i64, scratch_operands = 0 : i64, tpu.core_type = #tpu.core_type<tc>, window_params = [{transform_indices = @transform_0, window_bounds = array<i64: 8, 256>}, {transform_indices = @transform_1, window_bounds = array<i64: 8, 128>}, {pipeline_mode = #tpu.pipeline_mode<synchronous>, transform_indices = @transform_2, window_bounds = array<i64: 256, 256>}, {pipeline_mode = #tpu.pipeline_mode<synchronous>, transform_indices = @transform_3, window_bounds = array<i64: 1, 256>}, {pipeline_mode = #tpu.pipeline_mode<synchronous>, transform_indices = @transform_4, window_bounds = array<i64: 128, 128>}, {pipeline_mode = #tpu.pipeline_mode<synchronous>, transform_indices = @transform_5, window_bounds = array<i64: 1, 128>}, {pipeline_mode = #tpu.pipeline_mode<synchronous>, transform_indices = @transform_6, window_bounds = array<i64: 256, 256>}, {pipeline_mode = #tpu.pipeline_mode<synchronous>, transform_indices = @transform_7, window_bounds = array<i64: 128, 256>}, {pipeline_mode = #tpu.pipeline_mode<synchronous>, transform_indices = @transform_8, window_bounds = array<i64: 1, 256>}, {pipeline_mode = #tpu.pipeline_mode<synchronous>, transform_indices = @transform_9, window_bounds = array<i64: 1, 256>}, {pipeline_mode = #tpu.pipeline_mode<synchronous>, transform_indices = @transform_10, window_bounds = array<i64: 1, 256>}, {transform_indices = @transform_11, window_bounds = array<i64: 8, 256>}]} {
    %c0 = arith.constant 0 : index
    %c0_0 = arith.constant 0 : index
    %0 = vector.load %arg1[%c0, %c0_0] : memref<8x256xf32, #tpu.memory_space<vmem>>, vector<8x256xf32>
    %c0_1 = arith.constant 0 : index
    %c0_2 = arith.constant 0 : index
    %1 = vector.load %arg3[%c0_1, %c0_2] : memref<256x256xf32, #tpu.memory_space<vmem>>, vector<256x256xf32>
    %cst = arith.constant dense<0.000000e+00> : vector<8x256xf32>
    %2 = tpu.matmul %0, %1, %cst {dimension_numbers = #tpu.dot_dimension_numbers<[1], [0], [0], [1], [0, 0, 1, 1], [], []>} : vector<8x256xf32>, vector<256x256xf32>, vector<8x256xf32> -> vector<8x256xf32>
    %c0_3 = arith.constant 0 : index
    %c0_4 = arith.constant 0 : index
    %3 = vector.load %arg4[%c0_3, %c0_4] : memref<1x256xf32, #tpu.memory_space<vmem>>, vector<1x256xf32>
    %4 = vector.broadcast %3 : vector<1x256xf32> to vector<8x256xf32>
    %5 = arith.addf %2, %4 : vector<8x256xf32>
    %cst_5 = arith.constant 0.000000e+00 : f32
    %6 = vector.broadcast %cst_5 : f32 to vector<8x256xf32>
    %7 = arith.maximumf %5, %6 : vector<8x256xf32>
    %c0_6 = arith.constant 0 : index
    %c0_7 = arith.constant 0 : index
    %8 = vector.load %arg2[%c0_6, %c0_7] : memref<8x128xf32, #tpu.memory_space<vmem>>, vector<8x128xf32>
    %c0_8 = arith.constant 0 : index
    %c0_9 = arith.constant 0 : index
    %9 = vector.load %arg5[%c0_8, %c0_9] : memref<128x128xf32, #tpu.memory_space<vmem>>, vector<128x128xf32>
    %cst_10 = arith.constant dense<0.000000e+00> : vector<8x128xf32>
    %10 = tpu.matmul %8, %9, %cst_10 {dimension_numbers = #tpu.dot_dimension_numbers<[1], [0], [0], [1], [0, 0, 1, 1], [], []>} : vector<8x128xf32>, vector<128x128xf32>, vector<8x128xf32> -> vector<8x128xf32>
    %c0_11 = arith.constant 0 : index
    %c0_12 = arith.constant 0 : index
    %11 = vector.load %arg6[%c0_11, %c0_12] : memref<1x128xf32, #tpu.memory_space<vmem>>, vector<1x128xf32>
    %12 = vector.broadcast %11 : vector<1x128xf32> to vector<8x128xf32>
    %13 = arith.addf %10, %12 : vector<8x128xf32>
    %cst_13 = arith.constant 0.000000e+00 : f32
    %14 = vector.broadcast %cst_13 : f32 to vector<8x128xf32>
    %15 = arith.maximumf %13, %14 : vector<8x128xf32>
    %c0_14 = arith.constant 0 : index
    %c0_15 = arith.constant 0 : index
    %16 = vector.load %arg7[%c0_14, %c0_15] : memref<256x256xf32, #tpu.memory_space<vmem>>, vector<256x256xf32>
    %cst_16 = arith.constant dense<0.000000e+00> : vector<8x256xf32>
    %17 = tpu.matmul %7, %16, %cst_16 {dimension_numbers = #tpu.dot_dimension_numbers<[1], [0], [0], [1], [0, 0, 1, 1], [], []>} : vector<8x256xf32>, vector<256x256xf32>, vector<8x256xf32> -> vector<8x256xf32>
    %c0_17 = arith.constant 0 : index
    %c0_18 = arith.constant 0 : index
    %18 = vector.load %arg8[%c0_17, %c0_18] : memref<128x256xf32, #tpu.memory_space<vmem>>, vector<128x256xf32>
    %cst_19 = arith.constant dense<0.000000e+00> : vector<8x256xf32>
    %19 = tpu.matmul %15, %18, %cst_19 {dimension_numbers = #tpu.dot_dimension_numbers<[1], [0], [0], [1], [0, 0, 1, 1], [], []>} : vector<8x128xf32>, vector<128x256xf32>, vector<8x256xf32> -> vector<8x256xf32>
    %20 = arith.addf %17, %19 : vector<8x256xf32>
    %c0_20 = arith.constant 0 : index
    %c0_21 = arith.constant 0 : index
    %21 = vector.load %arg9[%c0_20, %c0_21] : memref<1x256xf32, #tpu.memory_space<vmem>>, vector<1x256xf32>
    %22 = vector.broadcast %21 : vector<1x256xf32> to vector<8x256xf32>
    %23 = arith.addf %20, %22 : vector<8x256xf32>
    %cst_22 = arith.constant dense<0.000000e+00> : vector<8xf32>
    %24 = vector.multi_reduction <add>, %23, %cst_22 [1] : vector<8x256xf32> to vector<8xf32>
    %25 = vector.shape_cast %24 : vector<8xf32> to vector<8x1xf32>
    %cst_23 = arith.constant 2.560000e+02 : f32
    %26 = vector.broadcast %cst_23 : f32 to vector<8x1xf32>
    %27 = arith.divf %25, %26 : vector<8x1xf32>
    %28 = vector.broadcast %27 : vector<8x1xf32> to vector<8x256xf32>
    %29 = arith.subf %23, %28 : vector<8x256xf32>
    %30 = arith.mulf %29, %29 : vector<8x256xf32>
    %cst_24 = arith.constant dense<0.000000e+00> : vector<8xf32>
    %31 = vector.multi_reduction <add>, %30, %cst_24 [1] : vector<8x256xf32> to vector<8xf32>
    %32 = vector.shape_cast %31 : vector<8xf32> to vector<8x1xf32>
    %cst_25 = arith.constant 2.560000e+02 : f32
    %33 = vector.broadcast %cst_25 : f32 to vector<8x1xf32>
    %34 = arith.divf %32, %33 : vector<8x1xf32>
    %cst_26 = arith.constant 9.99999974E-6 : f32
    %35 = vector.broadcast %cst_26 : f32 to vector<8x1xf32>
    %36 = arith.addf %34, %35 : vector<8x1xf32>
    %37 = math.rsqrt %36 : vector<8x1xf32>
    %38 = vector.broadcast %37 : vector<8x1xf32> to vector<8x256xf32>
    %39 = arith.mulf %29, %38 : vector<8x256xf32>
    %c0_27 = arith.constant 0 : index
    %c0_28 = arith.constant 0 : index
    %40 = vector.load %arg10[%c0_27, %c0_28] : memref<1x256xf32, #tpu.memory_space<vmem>>, vector<1x256xf32>
    %41 = vector.broadcast %40 : vector<1x256xf32> to vector<8x256xf32>
    %42 = arith.mulf %39, %41 : vector<8x256xf32>
    %c0_29 = arith.constant 0 : index
    %c0_30 = arith.constant 0 : index
    %43 = vector.load %arg11[%c0_29, %c0_30] : memref<1x256xf32, #tpu.memory_space<vmem>>, vector<1x256xf32>
    %44 = vector.broadcast %43 : vector<1x256xf32> to vector<8x256xf32>
    %45 = arith.addf %42, %44 : vector<8x256xf32>
    %c0_31 = arith.constant 0 : index
    %c0_32 = arith.constant 0 : index
    %46 = vector.load %arg12[%c0_31, %c0_32] : memref<8x256xf32, #tpu.memory_space<vmem>>, vector<8x256xf32>
    tpu.vector_store %arg12[%c0_31, %c0_32], %45 {strides = array<i32>} : memref<8x256xf32, #tpu.memory_space<vmem>>, vector<8x256xf32>,
    return
  }
  func.func @transform_0(%arg0: i32) -> (i32, i32) {
    %c0_i32 = arith.constant 0 : i32
    %c0_i32_0 = arith.constant 0 : i32
    return %arg0, %c0_i32 : i32, i32
  }
  func.func @transform_1(%arg0: i32) -> (i32, i32) {
    %c0_i32 = arith.constant 0 : i32
    %c0_i32_0 = arith.constant 0 : i32
    return %arg0, %c0_i32 : i32, i32
  }
  func.func @transform_2(%arg0: i32) -> (i32, i32) {
    %c0_i32 = arith.constant 0 : i32
    %c0_i32_0 = arith.constant 0 : i32
    %c0_i32_1 = arith.constant 0 : i32
    return %c0_i32, %c0_i32_0 : i32, i32
  }
  func.func @transform_3(%arg0: i32) -> (i32, i32) {
    %c0_i32 = arith.constant 0 : i32
    %c0_i32_0 = arith.constant 0 : i32
    %c0_i32_1 = arith.constant 0 : i32
    return %c0_i32, %c0_i32_0 : i32, i32
  }
  func.func @transform_4(%arg0: i32) -> (i32, i32) {
    %c0_i32 = arith.constant 0 : i32
    %c0_i32_0 = arith.constant 0 : i32
    %c0_i32_1 = arith.constant 0 : i32
    return %c0_i32, %c0_i32_0 : i32, i32
  }
  func.func @transform_5(%arg0: i32) -> (i32, i32) {
    %c0_i32 = arith.constant 0 : i32
    %c0_i32_0 = arith.constant 0 : i32
    %c0_i32_1 = arith.constant 0 : i32
    return %c0_i32, %c0_i32_0 : i32, i32
  }
  func.func @transform_6(%arg0: i32) -> (i32, i32) {
    %c0_i32 = arith.constant 0 : i32
    %c0_i32_0 = arith.constant 0 : i32
    %c0_i32_1 = arith.constant 0 : i32
    return %c0_i32, %c0_i32_0 : i32, i32
  }
  func.func @transform_7(%arg0: i32) -> (i32, i32) {
    %c0_i32 = arith.constant 0 : i32
    %c0_i32_0 = arith.constant 0 : i32
    %c0_i32_1 = arith.constant 0 : i32
    return %c0_i32, %c0_i32_0 : i32, i32
  }
  func.func @transform_8(%arg0: i32) -> (i32, i32) {
    %c0_i32 = arith.constant 0 : i32
    %c0_i32_0 = arith.constant 0 : i32
    %c0_i32_1 = arith.constant 0 : i32
    return %c0_i32, %c0_i32_0 : i32, i32
  }
  func.func @transform_9(%arg0: i32) -> (i32, i32) {
    %c0_i32 = arith.constant 0 : i32
    %c0_i32_0 = arith.constant 0 : i32
    %c0_i32_1 = arith.constant 0 : i32
    return %c0_i32, %c0_i32_0 : i32, i32
  }
  func.func @transform_10(%arg0: i32) -> (i32, i32) {
    %c0_i32 = arith.constant 0 : i32
    %c0_i32_0 = arith.constant 0 : i32
    %c0_i32_1 = arith.constant 0 : i32
    return %c0_i32, %c0_i32_0 : i32, i32
  }
  func.func @transform_11(%arg0: i32) -> (i32, i32) {
    %c0_i32 = arith.constant 0 : i32
    %c0_i32_0 = arith.constant 0 : i32
    return %arg0, %c0_i32 : i32, i32
  }
}

module attributes {stable_mosaic.version = 11 : i64} {
  func.func @_combined_kernel(%arg0: i32, %arg1: memref<8x256xf32, #tpu.memory_space<vmem>>, %arg2: memref<8x128xf32, #tpu.memory_space<vmem>>, %arg3: memref<256x256xf32, #tpu.memory_space<vmem>>, %arg4: memref<1x256xf32, #tpu.memory_space<vmem>>, %arg5: memref<128x128xf32, #tpu.memory_space<vmem>>, %arg6: memref<1x128xf32, #tpu.memory_space<vmem>>, %arg7: memref<256x256xf32, #tpu.memory_space<vmem>>, %arg8: memref<128x256xf32, #tpu.memory_space<vmem>>, %arg9: memref<1x256xf32, #tpu.memory_space<vmem>>, %arg10: memref<1x256xf32, #tpu.memory_space<vmem>>, %arg11: memref<1x256xf32, #tpu.memory_space<vmem>>, %arg12: memref<8x256xf32, #tpu.memory_space<vmem>>) attributes {dimension_semantics = [#tpu.dimension_semantics<parallel>], iteration_bounds = array<i64: 1>, scalar_prefetch = 0 : i64, scratch_operands = 0 : i64, tpu.core_type = #tpu.core_type<tc>, window_params = [{transform_indices = @transform_0, window_bounds = array<i64: 8, 256>}, {transform_indices = @transform_1, window_bounds = array<i64: 8, 128>}, {pipeline_mode = #tpu.pipeline_mode<synchronous>, transform_indices = @transform_2, window_bounds = array<i64: 256, 256>}, {pipeline_mode = #tpu.pipeline_mode<synchronous>, transform_indices = @transform_3, window_bounds = array<i64: 1, 256>}, {pipeline_mode = #tpu.pipeline_mode<synchronous>, transform_indices = @transform_4, window_bounds = array<i64: 128, 128>}, {pipeline_mode = #tpu.pipeline_mode<synchronous>, transform_indices = @transform_5, window_bounds = array<i64: 1, 128>}, {pipeline_mode = #tpu.pipeline_mode<synchronous>, transform_indices = @transform_6, window_bounds = array<i64: 256, 256>}, {pipeline_mode = #tpu.pipeline_mode<synchronous>, transform_indices = @transform_7, window_bounds = array<i64: 128, 256>}, {pipeline_mode = #tpu.pipeline_mode<synchronous>, transform_indices = @transform_8, window_bounds = array<i64: 1, 256>}, {pipeline_mode = #tpu.pipeline_mode<synchronous>, transform_indices = @transform_9, window_bounds = array<i64: 1, 256>}, {pipeline_mode = #tpu.pipeline_mode<synchronous>, transform_indices = @transform_10, window_bounds = array<i64: 1, 256>}, {transform_indices = @transform_11, window_bounds = array<i64: 8, 256>}]} {
    %c0 = arith.constant 0 : index
    %c0_0 = arith.constant 0 : index
    %0 = vector.load %arg1[%c0, %c0_0] : memref<8x256xf32, #tpu.memory_space<vmem>>, vector<8x256xf32>
    %c0_1 = arith.constant 0 : index
    %c0_2 = arith.constant 0 : index
    %1 = vector.load %arg3[%c0_1, %c0_2] : memref<256x256xf32, #tpu.memory_space<vmem>>, vector<256x256xf32>
    %cst = arith.constant dense<0.000000e+00> : vector<8x256xf32>
    %2 = tpu.matmul %0, %1, %cst {dimension_numbers = #tpu.dot_dimension_numbers<[1], [0], [0], [1], [0, 0, 1, 1], [], []>} : vector<8x256xf32>, vector<256x256xf32>, vector<8x256xf32> -> vector<8x256xf32>
    %c0_3 = arith.constant 0 : index
    %c0_4 = arith.constant 0 : index
    %3 = vector.load %arg4[%c0_3, %c0_4] : memref<1x256xf32, #tpu.memory_space<vmem>>, vector<1x256xf32>
    %4 = vector.broadcast %3 : vector<1x256xf32> to vector<8x256xf32>
    %5 = arith.addf %2, %4 : vector<8x256xf32>
    %cst_5 = arith.constant 0.000000e+00 : f32
    %6 = vector.broadcast %cst_5 : f32 to vector<8x256xf32>
    %7 = arith.maximumf %5, %6 : vector<8x256xf32>
    %c0_6 = arith.constant 0 : index
    %c0_7 = arith.constant 0 : index
    %8 = vector.load %arg2[%c0_6, %c0_7] : memref<8x128xf32, #tpu.memory_space<vmem>>, vector<8x128xf32>
    %c0_8 = arith.constant 0 : index
    %c0_9 = arith.constant 0 : index
    %9 = vector.load %arg5[%c0_8, %c0_9] : memref<128x128xf32, #tpu.memory_space<vmem>>, vector<128x128xf32>
    %cst_10 = arith.constant dense<0.000000e+00> : vector<8x128xf32>
    %10 = tpu.matmul %8, %9, %cst_10 {dimension_numbers = #tpu.dot_dimension_numbers<[1], [0], [0], [1], [0, 0, 1, 1], [], []>} : vector<8x128xf32>, vector<128x128xf32>, vector<8x128xf32> -> vector<8x128xf32>
    %c0_11 = arith.constant 0 : index
    %c0_12 = arith.constant 0 : index
    %11 = vector.load %arg6[%c0_11, %c0_12] : memref<1x128xf32, #tpu.memory_space<vmem>>, vector<1x128xf32>
    %12 = vector.broadcast %11 : vector<1x128xf32> to vector<8x128xf32>
    %13 = arith.addf %10, %12 : vector<8x128xf32>
    %cst_13 = arith.constant 0.000000e+00 : f32
    %14 = vector.broadcast %cst_13 : f32 to vector<8x128xf32>
    %15 = arith.maximumf %13, %14 : vector<8x128xf32>
    %c0_14 = arith.constant 0 : index
    %c0_15 = arith.constant 0 : index
    %16 = vector.load %arg7[%c0_14, %c0_15] : memref<256x256xf32, #tpu.memory_space<vmem>>, vector<256x256xf32>
    %cst_16 = arith.constant dense<0.000000e+00> : vector<8x256xf32>
    %17 = tpu.matmul %7, %16, %cst_16 {dimension_numbers = #tpu.dot_dimension_numbers<[1], [0], [0], [1], [0, 0, 1, 1], [], []>} : vector<8x256xf32>, vector<256x256xf32>, vector<8x256xf32> -> vector<8x256xf32>
    %c0_17 = arith.constant 0 : index
    %c0_18 = arith.constant 0 : index
    %18 = vector.load %arg8[%c0_17, %c0_18] : memref<128x256xf32, #tpu.memory_space<vmem>>, vector<128x256xf32>
    %cst_19 = arith.constant dense<0.000000e+00> : vector<8x256xf32>
    %19 = tpu.matmul %15, %18, %cst_19 {dimension_numbers = #tpu.dot_dimension_numbers<[1], [0], [0], [1], [0, 0, 1, 1], [], []>} : vector<8x128xf32>, vector<128x256xf32>, vector<8x256xf32> -> vector<8x256xf32>
    %20 = arith.addf %17, %19 : vector<8x256xf32>
    %c0_20 = arith.constant 0 : index
    %c0_21 = arith.constant 0 : index
    %21 = vector.load %arg9[%c0_20, %c0_21] : memref<1x256xf32, #tpu.memory_space<vmem>>, vector<1x256xf32>
    %22 = vector.broadcast %21 : vector<1x256xf32> to vector<8x256xf32>
    %23 = arith.addf %20, %22 : vector<8x256xf32>
    %cst_22 = arith.constant dense<0.000000e+00> : vector<8xf32>
    %24 = vector.multi_reduction <add>, %23, %cst_22 [1] : vector<8x256xf32> to vector<8xf32>
    %25 = vector.shape_cast %24 : vector<8xf32> to vector<8x1xf32>
    %cst_23 = arith.constant 2.560000e+02 : f32
    %26 = vector.broadcast %cst_23 : f32 to vector<8x1xf32>
    %27 = arith.divf %25, %26 : vector<8x1xf32>
    %28 = vector.broadcast %27 : vector<8x1xf32> to vector<8x256xf32>
    %29 = arith.subf %23, %28 : vector<8x256xf32>
    %30 = arith.mulf %29, %29 : vector<8x256xf32>
    %cst_24 = arith.constant dense<0.000000e+00> : vector<8xf32>
    %31 = vector.multi_reduction <add>, %30, %cst_24 [1] : vector<8x256xf32> to vector<8xf32>
    %32 = vector.shape_cast %31 : vector<8xf32> to vector<8x1xf32>
    %cst_25 = arith.constant 2.560000e+02 : f32
    %33 = vector.broadcast %cst_25 : f32 to vector<8x1xf32>
    %34 = arith.divf %32, %33 : vector<8x1xf32>
    %cst_26 = arith.constant 9.99999974E-6 : f32
    %35 = vector.broadcast %cst_26 : f32 to vector<8x1xf32>
    %36 = arith.addf %34, %35 : vector<8x1xf32>
    %37 = math.rsqrt %36 : vector<8x1xf32>
    %38 = vector.broadcast %37 : vector<8x1xf32> to vector<8x256xf32>
    %39 = arith.mulf %29, %38 : vector<8x256xf32>
    %c0_27 = arith.constant 0 : index
    %c0_28 = arith.constant 0 : index
    %40 = vector.load %arg10[%c0_27, %c0_28] : memref<1x256xf32, #tpu.memory_space<vmem>>, vector<1x256xf32>
    %41 = vector.broadcast %40 : vector<1x256xf32> to vector<8x256xf32>
    %42 = arith.mulf %39, %41 : vector<8x256xf32>
    %c0_29 = arith.constant 0 : index
    %c0_30 = arith.constant 0 : index
    %43 = vector.load %arg11[%c0_29, %c0_30] : memref<1x256xf32, #tpu.memory_space<vmem>>, vector<1x256xf32>
    %44 = vector.broadcast %43 : vector<1x256xf32> to vector<8x256xf32>
    %45 = arith.addf %42, %44 : vector<8x256xf32>
    %c0_31 = arith.constant 0 : index
    %c0_32 = arith.constant 0 : index
    %46 = vector.load %arg12[%c0_31, %c0_32] : memref<8x256xf32, #tpu.memory_space<vmem>>, vector<8x256xf32>
    tpu.vector_store %arg12[%c0_31, %c0_32], %45 {strides = array<i32>} : memref<8x256xf32, #tpu.memory_space<vmem>>, vector<8x256xf32>,
    return
  }
  func.func @transform_0(%arg0: i32) -> (i32, i32) {
    %c0_i32 = arith.constant 0 : i32
    %c0_i32_0 = arith.constant 0 : i32
    return %arg0, %c0_i32 : i32, i32
  }
  func.func @transform_1(%arg0: i32) -> (i32, i32) {
    %c0_i32 = arith.constant 0 : i32
    %c0_i32_0 = arith.constant 0 : i32
    return %arg0, %c0_i32 : i32, i32
  }
  func.func @transform_2(%arg0: i32) -> (i32, i32) {
    %c0_i32 = arith.constant 0 : i32
    %c0_i32_0 = arith.constant 0 : i32
    %c0_i32_1 = arith.constant 0 : i32
    return %c0_i32, %c0_i32_0 : i32, i32
  }
  func.func @transform_3(%arg0: i32) -> (i32, i32) {
    %c0_i32 = arith.constant 0 : i32
    %c0_i32_0 = arith.constant 0 : i32
    %c0_i32_1 = arith.constant 0 : i32
    return %c0_i32, %c0_i32_0 : i32, i32
  }
  func.func @transform_4(%arg0: i32) -> (i32, i32) {
    %c0_i32 = arith.constant 0 : i32
    %c0_i32_0 = arith.constant 0 : i32
    %c0_i32_1 = arith.constant 0 : i32
    return %c0_i32, %c0_i32_0 : i32, i32
  }
  func.func @transform_5(%arg0: i32) -> (i32, i32) {
    %c0_i32 = arith.constant 0 : i32
    %c0_i32_0 = arith.constant 0 : i32
    %c0_i32_1 = arith.constant 0 : i32
    return %c0_i32, %c0_i32_0 : i32, i32
  }
  func.func @transform_6(%arg0: i32) -> (i32, i32) {
    %c0_i32 = arith.constant 0 : i32
    %c0_i32_0 = arith.constant 0 : i32
    %c0_i32_1 = arith.constant 0 : i32
    return %c0_i32, %c0_i32_0 : i32, i32
  }
  func.func @transform_7(%arg0: i32) -> (i32, i32) {
    %c0_i32 = arith.constant 0 : i32
    %c0_i32_0 = arith.constant 0 : i32
    %c0_i32_1 = arith.constant 0 : i32
    return %c0_i32, %c0_i32_0 : i32, i32
  }
  func.func @transform_8(%arg0: i32) -> (i32, i32) {
    %c0_i32 = arith.constant 0 : i32
    %c0_i32_0 = arith.constant 0 : i32
    %c0_i32_1 = arith.constant 0 : i32
    return %c0_i32, %c0_i32_0 : i32, i32
  }
  func.func @transform_9(%arg0: i32) -> (i32, i32) {
    %c0_i32 = arith.constant 0 : i32
    %c0_i32_0 = arith.constant 0 : i32
    %c0_i32_1 = arith.constant 0 : i32
    return %c0_i32, %c0_i32_0 : i32, i32
  }
  func.func @transform_10(%arg0: i32) -> (i32, i32) {
    %c0_i32 = arith.constant 0 : i32
    %c0_i32_0 = arith.constant 0 : i32
    %c0_i32_1 = arith.constant 0 : i32
    return %c0_i32, %c0_i32_0 : i32, i32
  }
  func.func @transform_11(%arg0: i32) -> (i32, i32) {
    %c0_i32 = arith.constant 0 : i32
    %c0_i32_0 = arith.constant 0 : i32
    return %arg0, %c0_i32 : i32, i32
  }
}

</mosaic_0001>

<bundles_post_ra>
// kernel: tpu_custom_call.1
= control target key start
LH: loop header
LB: loop body
LE: loop exit
PB: predicated region body
PF: predicated region fallthrough
CT: control target
= control target key end

     0   :  { %16 = vsyncpa [#allocation3], 0  ;;  %s961_s0 = inlined_call_operand.hbm [shape: f32[8,256], index: 0, kind: input, shape index: {}]   ;;  %s962_s1 = inlined_call_operand.hbm [shape: f32[8,128], index: 1, kind: input, shape index: {}]   ;;  %s963_s2 = inlined_call_operand.hbm [shape: f32[256,256], index: 2, kind: input, shape index: {}]   ;;  %s964_s3 = inlined_call_operand.vmem [shape: f32[1,256], index: 3, kind: input, shape index: {}]   ;;  %s965_s4 = inlined_call_operand.hbm [shape: f32[128,128], index: 4, kind: input, shape index: {}]   ;;  %s966_s5 = inlined_call_operand.hbm [shape: f32[1,128], index: 5, kind: input, shape index: {}]   ;;  %s967_s6 = inlined_call_operand.hbm [shape: f32[256,256], index: 6, kind: input, shape index: {}]   ;;  %s968_s7 = inlined_call_operand.hbm [shape: f32[128,256], index: 7, kind: input, shape index: {}]   ;;  %s969_s8 = inlined_call_operand.vmem [shape: f32[1,256], index: 8, kind: input, shape index: {}]   ;;  %s970_s9 = inlined_call_operand.vmem [shape: f32[1,256], index: 9, kind: input, shape index: {}]   ;;  %s971_s10 = inlined_call_operand.vmem [shape: f32[1,256], index: 10, kind: input, shape index: {}]   ;;  %s972_s11 = inlined_call_operand.hbm [shape: f32[8,256], index: 11, kind: output, shape index: {}]  }
   0x1   :  { %17 = vsyncpa [#allocation6], 0 }
   0x2   :  { %18 = vsyncpa [#allocation9], 0 }
   0x3   :  { %19 = vsyncpa [#allocation12], 0  ;;  %s37_s19 = sshll.u32 %s962_s1, 4  ;;  %s38_s19 = int_to_ptr.hbm [resolvable:$true] %s37_s19 }
   0x4   :  { %20 = vsyncpa [#allocation4], 0  ;;  %s852_s20 = smov [#allocation5]   ;;  %s62_s24 = sshll.u32 %s965_s4, 4  ;;  %s63_s24 = int_to_ptr.hbm [resolvable:$true] %s62_s24 }
   0x5   :  { %s39_s21 = sshll.u32 %s852_s20, 4  ;;  %s853_s25 = smov [#allocation8]   ;;  %s40_s21 = int_to_ptr.vmem [resolvable:$true] %s39_s21 }
   0x6   :  { %42 = dma.hbm_to_vmem [thread:$0]  %s38_s19, 128, %s40_s21, [#allocation6]  }
   0x7   :  { %s64_s26 = sshll.u32 %s853_s25, 4  ;;  %s854_s27 = smov 128   ;;  %s65_s26 = int_to_ptr.vmem [resolvable:$true] %s64_s26 }
   0x8   :  { %s855_s28 = smov 8   ;;  %s86_s1 = sshll.u32 %s967_s6, 4  ;;  %s87_s1 = int_to_ptr.hbm [resolvable:$true] %s86_s1 }
   0x9   :  { %70 = dma.hbm_to_vmem [thread:$0]  %s63_s24, 2048, %s65_s26, [#allocation9], %s854_s27, %s854_s27, %s855_s28  }
   0xa   :  { %s856_s12 = smov [#allocation11]   ;;  %s26_s4 = sshll.u32 %s961_s0, 4  ;;  %s27_s4 = int_to_ptr.hbm [resolvable:$true] %s26_s4 }
   0xb   :  { %s88_s13 = sshll.u32 %s856_s12, 4  ;;  %s857_s16 = smov 256   ;;  %s89_s13 = int_to_ptr.vmem [resolvable:$true] %s88_s13 }
   0xc   :  { %s858_s17 = smov 16   ;;  %s859_s18 = smov [#allocation2]  }
   0xd   :  { %94 = dma.hbm_to_vmem [thread:$0]  %s87_s1, 8192, %s89_s13, [#allocation12], %s857_s16, %s857_s16, %s858_s17  }
   0xe   :  { %s28_s19 = sshll.u32 %s859_s18, 4  ;;  %s47_s22 = sshll.u32 %s963_s2, 4  ;;  %s29_s19 = int_to_ptr.vmem [resolvable:$true] %s28_s19  ;;  %s48_s22 = int_to_ptr.hbm [resolvable:$true] %s47_s22 }
   0xf   :  { %31 = dma.hbm_to_vmem [thread:$0]  %s27_s4, 256, %s29_s19, [#allocation3]  }
  0x10   :  { %s76_s24 = sshll.u32 %s966_s5, 4  ;;  %s860_s25 = smov [#allocation7]   ;;  %s77_s24 = int_to_ptr.hbm [resolvable:$true] %s76_s24 }
  0x11   :  { %s49_s26 = sshll.u32 %s860_s25, 4  ;;  %s861_s0 = smov [#allocation10]   ;;  %s50_s26 = int_to_ptr.vmem [resolvable:$true] %s49_s26 }
  0x12   :  { %55 = dma.hbm_to_vmem [thread:$0]  %s48_s22, 8192, %s50_s26, [#allocation6], %s857_s16, %s857_s16, %s858_s17  }
  0x13   :  { %s78_s27 = sshll.u32 %s861_s0, 4  ;;  %s99_s30 = sshll.u32 %s968_s7, 4  ;;  %s79_s27 = int_to_ptr.vmem [resolvable:$true] %s78_s27  ;;  %s100_s30 = int_to_ptr.hbm [resolvable:$true] %s99_s30 }
  0x14   :  { %81 = dma.hbm_to_vmem [thread:$0]  %s77_s24, 16, %s79_s27, [#allocation9]  }
  0x15   :  { %s862_s2 = smov [#allocation13]  }
  0x16   :  { %s101_s1 = sshll.u32 %s862_s2, 4  ;;  %s102_s1 = int_to_ptr.vmem [resolvable:$true] %s101_s1 }
  0x17   :  { %107 = dma.hbm_to_vmem [thread:$0]  %s100_s30, 4096, %s102_s1, [#allocation12], %s857_s16, %s857_s16, %s858_s17  }
  0x18   :  { %842 = dma.done.wait [#allocation3], 256  }
  0x19   :  { %843 = vsyncadd [#allocation3], 4294967040 }
  0x1a   :  { %844 = dma.done.wait [#allocation6], 8320  }
  0x1b   :  { %845 = vsyncadd [#allocation6], 4294958976 }
  0x1c   :  { %846 = dma.done.wait [#allocation9], 2064  }
  0x1d   :  { %847 = vsyncadd [#allocation9], 4294965232 }
  0x1e   :  { %848 = dma.done.wait [#allocation12], 12288  }
  0x1f   :  { %849 = vsyncadd [#allocation12], 4294955008  ;;  %v174_v0 = vld [vmem:[#allocation7 + $0xf0] sm:$0xff]  ;;  %v172_v1 = vld [vmem:[#allocation7 + $0xe0] sm:$0xff]  ;;  %s864_s4 = smov [#allocation14]   ;;  %s619_s18 = sshll.u32 %s972_s11, 4  ;;  %s620_s18 = int_to_ptr.hbm [resolvable:$true] %s619_s18 }
  0x20   :  { %214 = vmatpush.msra.mxu0 %v174_v0  ;;  %v170_v2 = vld [vmem:[#allocation7 + $0xd0] sm:$0xff]  ;;  %v168_v3 = vld [vmem:[#allocation7 + $0xc0] sm:$0xff]  ;;  %v175_v5 = vld [vmem:[#allocation7 + $0xf8] sm:$0xff]  ;;  %s617_s16 = sshll.u32 %s864_s4, 4  ;;  %s618_s16 = int_to_ptr.vmem [resolvable:$true] %s617_s16 }
  0x21   :  { %v206_v4 = vld [vmem:[#allocation7 + $0x1f0] sm:$0xff]  ;;  %v204_v6 = vld [vmem:[#allocation7 + $0x1e0] sm:$0xff]  ;;  %v173_v7 = vld [vmem:[#allocation7 + $0xe8] sm:$0xff]  ;;  %254 = vmatpush.msra.mxu2 %v175_v5 }
  0x22   :  { %215 = vmatpush.msra.mxu0 %v172_v1  ;;  %234 = vmatpush.msra.mxu1 %v206_v4  ;;  %v166_v8 = vld [vmem:[#allocation7 + $0xb0] sm:$0xff]  ;;  %v207_v9 = vld [vmem:[#allocation7 + $0x1f8] sm:$0xff]  ;;  %v205_v12 = vld [vmem:[#allocation7 + $0x1e8] sm:$0xff] }
  0x23   :  { %v202_v10 = vld [vmem:[#allocation7 + $0x1d0] sm:$0xff]  ;;  %v171_v11 = vld [vmem:[#allocation7 + $0xd8] sm:$0xff]  ;;  %v164_v13 = vld [vmem:[#allocation7 + $0xa0] sm:$0xff]  ;;  %255 = vmatpush.msra.mxu2 %v173_v7  ;;  %274 = vmatpush.msra.mxu3 %v207_v9 }
  0x24   :  { %216 = vmatpush.msra.mxu0 %v170_v2  ;;  %235 = vmatpush.msra.mxu1 %v204_v6  ;;  %v200_v14 = vld [vmem:[#allocation7 + $0x1c0] sm:$0xff]  ;;  %v169_v15 = vld [vmem:[#allocation7 + $0xc8] sm:$0xff]  ;;  %v203_v16 = vld [vmem:[#allocation7 + $0x1d8] sm:$0xff] }
  0x25   :  { %v162_v17 = vld [vmem:[#allocation7 + $0x90] sm:$0xff]  ;;  %256 = vmatpush.msra.mxu2 %v171_v11  ;;  %275 = vmatpush.msra.mxu3 %v205_v12  ;;  %v167_v19 = vld [vmem:[#allocation7 + $0xb8] sm:$0xff]  ;;  %v201_v20 = vld [vmem:[#allocation7 + $0x1c8] sm:$0xff] }
  0x26   :  { %217 = vmatpush.msra.mxu0 %v168_v3  ;;  %236 = vmatpush.msra.mxu1 %v202_v10  ;;  %v198_v18 = vld [vmem:[#allocation7 + $0x1b0] sm:$0xff]  ;;  %v160_v21 = vld [vmem:[#allocation7 + $0x80] sm:$0xff]  ;;  %v165_v23 = vld [vmem:[#allocation7 + $0xa8] sm:$0xff] }
  0x27   :  { %257 = vmatpush.msra.mxu2 %v169_v15  ;;  %276 = vmatpush.msra.mxu3 %v203_v16  ;;  %v196_v22 = vld [vmem:[#allocation7 + $0x1a0] sm:$0xff]  ;;  %v199_v24 = vld [vmem:[#allocation7 + $0x1b8] sm:$0xff]  ;;  %v158_v25 = vld [vmem:[#allocation7 + $0x70] sm:$0xff] }
  0x28   :  { %218 = vmatpush.msra.mxu0 %v166_v8  ;;  %237 = vmatpush.msra.mxu1 %v200_v14  ;;  %v194_v26 = vld [vmem:[#allocation7 + $0x190] sm:$0xff]  ;;  %v163_v27 = vld [vmem:[#allocation7 + $0x98] sm:$0xff]  ;;  %v197_v28 = vld [vmem:[#allocation7 + $0x1a8] sm:$0xff] }
  0x29   :  { %258 = vmatpush.msra.mxu2 %v167_v19  ;;  %277 = vmatpush.msra.mxu3 %v201_v20  ;;  %v156_v29 = vld [vmem:[#allocation7 + $0x60] sm:$0xff]  ;;  %v161_v31 = vld [vmem:[#allocation7 + $0x88] sm:$0xff]  ;;  %v195_v32 = vld [vmem:[#allocation7 + $0x198] sm:$0xff] }
  0x2a   :  { %219 = vmatpush.msra.mxu0 %v164_v13  ;;  %238 = vmatpush.msra.mxu1 %v198_v18  ;;  %v192_v30 = vld [vmem:[#allocation7 + $0x180] sm:$0xff]  ;;  %v154_v33 = vld [vmem:[#allocation7 + $0x50] sm:$0xff]  ;;  %v159_v35 = vld [vmem:[#allocation7 + $0x78] sm:$0xff] }
  0x2b   :  { %259 = vmatpush.msra.mxu2 %v165_v23  ;;  %278 = vmatpush.msra.mxu3 %v199_v24  ;;  %v190_v34 = vld [vmem:[#allocation7 + $0x170] sm:$0xff]  ;;  %v193_v36 = vld [vmem:[#allocation7 + $0x188] sm:$0xff]  ;;  %v152_v37 = vld [vmem:[#allocation7 + $0x40] sm:$0xff] }
  0x2c   :  { %220 = vmatpush.msra.mxu0 %v162_v17  ;;  %239 = vmatpush.msra.mxu1 %v196_v22  ;;  %v188_v38 = vld [vmem:[#allocation7 + $0x160] sm:$0xff]  ;;  %v157_v39 = vld [vmem:[#allocation7 + $0x68] sm:$0xff]  ;;  %v191_v40 = vld [vmem:[#allocation7 + $0x178] sm:$0xff] }
  0x2d   :  { %260 = vmatpush.msra.mxu2 %v163_v27  ;;  %279 = vmatpush.msra.mxu3 %v197_v28  ;;  %v150_v41 = vld [vmem:[#allocation7 + $0x30] sm:$0xff]  ;;  %v155_v43 = vld [vmem:[#allocation7 + $0x58] sm:$0xff]  ;;  %v189_v44 = vld [vmem:[#allocation7 + $0x168] sm:$0xff] }
  0x2e   :  { %221 = vmatpush.msra.mxu0 %v160_v21  ;;  %240 = vmatpush.msra.mxu1 %v194_v26  ;;  %v186_v42 = vld [vmem:[#allocation7 + $0x150] sm:$0xff]  ;;  %v148_v45 = vld [vmem:[#allocation7 + $0x20] sm:$0xff]  ;;  %v153_v47 = vld [vmem:[#allocation7 + $0x48] sm:$0xff] }
  0x2f   :  { %261 = vmatpush.msra.mxu2 %v161_v31  ;;  %280 = vmatpush.msra.mxu3 %v195_v32  ;;  %v184_v46 = vld [vmem:[#allocation7 + $0x140] sm:$0xff]  ;;  %v187_v48 = vld [vmem:[#allocation7 + $0x158] sm:$0xff]  ;;  %v146_v49 = vld [vmem:[#allocation7 + $0x10] sm:$0xff] }
  0x30   :  { %222 = vmatpush.msra.mxu0 %v158_v25  ;;  %241 = vmatpush.msra.mxu1 %v192_v30  ;;  %v182_v50 = vld [vmem:[#allocation7 + $0x130] sm:$0xff]  ;;  %v151_v51 = vld [vmem:[#allocation7 + $0x38] sm:$0xff]  ;;  %v185_v52 = vld [vmem:[#allocation7 + $0x148] sm:$0xff] }
  0x31   :  { %262 = vmatpush.msra.mxu2 %v159_v35  ;;  %281 = vmatpush.msra.mxu3 %v193_v36  ;;  %v144_v53 = vld [vmem:[#allocation7] sm:$0xff]  ;;  %v312_v55 = vld [vmem:[#allocation8 + $0x78] sm:$0xff]  ;;  %v149_v56 = vld [vmem:[#allocation7 + $0x28] sm:$0xff] }
  0x32   :  { %223 = vmatpush.msra.mxu0 %v156_v29  ;;  %242 = vmatpush.msra.mxu1 %v190_v34  ;;  %v180_v54 = vld [vmem:[#allocation7 + $0x120] sm:$0xff]  ;;  %v183_v57 = vld [vmem:[#allocation7 + $0x138] sm:$0xff]  ;;  %v178_v58 = vld [vmem:[#allocation7 + $0x110] sm:$0xff] }
  0x33   :  { %263 = vmatpush.msra.mxu2 %v157_v39  ;;  %282 = vmatpush.msra.mxu3 %v191_v40  ;;  %v311_v59 = vld [vmem:[#allocation8 + $0x70] sm:$0xff]  ;;  %v147_v60 = vld [vmem:[#allocation7 + $0x18] sm:$0xff]  ;;  %v181_v61 = vld [vmem:[#allocation7 + $0x128] sm:$0xff] }
  0x34   :  { %224 = vmatpush.msra.mxu0 %v154_v33  ;;  %243 = vmatpush.msra.mxu1 %v188_v38  ;;  %v142_v62 = vld [vmem:[#allocation2] sm:$0xff]  ;;  %v176_v0 = vld [vmem:[#allocation7 + $0x100] sm:$0xff]  ;;  %v179_v2 = vld [vmem:[#allocation7 + $0x118] sm:$0xff] }
  0x35   :  { %264 = vmatpush.msra.mxu2 %v155_v43  ;;  %283 = vmatpush.msra.mxu3 %v189_v44  ;;  %v310_v63 = vld [vmem:[#allocation8 + $0x68] sm:$0xff]  ;;  %v309_v3 = vld [vmem:[#allocation8 + $0x60] sm:$0xff]  ;;  %v143_v4 = vld [vmem:[#allocation2 + $0x8] sm:$0xff] }
  0x36   :  { %225 = vmatpush.msra.mxu0 %v152_v37  ;;  %244 = vmatpush.msra.mxu1 %v186_v42  ;;  %v145_v1 = vld [vmem:[#allocation7 + $0x8] sm:$0xff]  ;;  %v308_v6 = vld [vmem:[#allocation8 + $0x58] sm:$0xff]  ;;  %v307_v9 = vld [vmem:[#allocation8 + $0x50] sm:$0xff] }
  0x37   :  { %265 = vmatpush.msra.mxu2 %v153_v47  ;;  %284 = vmatpush.msra.mxu3 %v187_v48  ;;  %v177_v5 = vld [vmem:[#allocation7 + $0x108] sm:$0xff]  ;;  %v432_v7 = vld [vmem:[#allocation13 + $0xf0] sm:$0xff]  ;;  %v433_v8 = vld [vmem:[#allocation13 + $0xf8] sm:$0xff] }
  0x38   :  { %226 = vmatpush.msra.mxu0 %v150_v41  ;;  %245 = vmatpush.msra.mxu1 %v184_v46  ;;  %v368_v10 = vld [vmem:[#allocation11 + $0xf0] sm:$0xff]  ;;  %v430_v11 = vld [vmem:[#allocation13 + $0xe0] sm:$0xff]  ;;  %v431_v12 = vld [vmem:[#allocation13 + $0xe8] sm:$0xff] }
  0x39   :  { %266 = vmatpush.msra.mxu2 %v151_v51  ;;  %285 = vmatpush.msra.mxu3 %v185_v52  ;;  %v306_v13 = vld [vmem:[#allocation8 + $0x48] sm:$0xff]  ;;  %v428_v15 = vld [vmem:[#allocation13 + $0xd0] sm:$0xff]  ;;  %v429_v16 = vld [vmem:[#allocation13 + $0xd8] sm:$0xff] }
  0x3a   :  { %227 = vmatpush.msra.mxu0 %v148_v45  ;;  %246 = vmatpush.msra.mxu1 %v182_v50  ;;  %v366_v14 = vld [vmem:[#allocation11 + $0xe0] sm:$0xff]  ;;  %v364_v18 = vld [vmem:[#allocation11 + $0xd0] sm:$0xff]  ;;  %v427_v20 = vld [vmem:[#allocation13 + $0xc8] sm:$0xff] }
  0x3b   :  { %267 = vmatpush.msra.mxu2 %v149_v56  ;;  %286 = vmatpush.msra.mxu3 %v183_v57  ;;  %v305_v17 = vld [vmem:[#allocation8 + $0x40] sm:$0xff]  ;;  %v304_v21 = vld [vmem:[#allocation8 + $0x38] sm:$0xff]  ;;  %v303_v25 = vld [vmem:[#allocation8 + $0x30] sm:$0xff] }
  0x3c   :  { %228 = vmatpush.msra.mxu0 %v146_v49  ;;  %247 = vmatpush.msra.mxu1 %v180_v54  ;;  %v426_v19 = vld [vmem:[#allocation13 + $0xc0] sm:$0xff]  ;;  %v424_v23 = vld [vmem:[#allocation13 + $0xb0] sm:$0xff]  ;;  %v425_v24 = vld [vmem:[#allocation13 + $0xb8] sm:$0xff] }
  0x3d   :  { %268 = vmatpush.msra.mxu2 %v147_v60  ;;  %287 = vmatpush.msra.mxu3 %v181_v61  ;;  %v362_v22 = vld [vmem:[#allocation11 + $0xc0] sm:$0xff]  ;;  %v360_v26 = vld [vmem:[#allocation11 + $0xb0] sm:$0xff]  ;;  %v423_v28 = vld [vmem:[#allocation13 + $0xa8] sm:$0xff] }
  0x3e   :  { %229 = vmatpush.msra.mxu0 %v144_v53  ;;  %248 = vmatpush.msra.mxu1 %v178_v58  ;;  %v422_v27 = vld [vmem:[#allocation13 + $0xa0] sm:$0xff]  ;;  %v420_v31 = vld [vmem:[#allocation13 + $0x90] sm:$0xff]  ;;  %v421_v32 = vld [vmem:[#allocation13 + $0x98] sm:$0xff] }
  0x3f   :  { %230 = vmatmul.f32.vlgmr.msra.gmra.mxu0 %v142_v62  ;;  %269 = vmatpush.msra.mxu2 %v145_v1  ;;  %v302_v29 = vld [vmem:[#allocation8 + $0x28] sm:$0xff]  ;;  %v301_v33 = vld [vmem:[#allocation8 + $0x20] sm:$0xff]  ;;  %v356_v34 = vld [vmem:[#allocation11 + $0x90] sm:$0xff] }
  0x40   :  { %317 = vmatpush.msrb.mxu0 %v312_v55  ;;  %249 = vmatpush.msra.mxu1 %v176_v0  ;;  %v358_v30 = vld [vmem:[#allocation11 + $0xa0] sm:$0xff]  ;;  %v419_v36 = vld [vmem:[#allocation13 + $0x88] sm:$0xff]  ;;  %v300_v37 = vld [vmem:[#allocation8 + $0x18] sm:$0xff] }
  0x41   :  { %288 = vmatpush.msra.mxu3 %v179_v2  ;;  %250 = vmatmul.f32.vlgmr.msra.gmra.mxu1 %v143_v4  ;;  %v418_v35 = vld [vmem:[#allocation13 + $0x80] sm:$0xff]  ;;  %v416_v39 = vld [vmem:[#allocation13 + $0x70] sm:$0xff]  ;;  %v417_v40 = vld [vmem:[#allocation13 + $0x78] sm:$0xff] }
  0x42   :  { %318 = vmatpush.msrb.mxu0 %v311_v59  ;;  %270 = vmatmul.f32.vlgmr.msra.gmra.mxu2 %v142_v62  ;;  %v354_v38 = vld [vmem:[#allocation11 + $0x80] sm:$0xff]  ;;  %v299_v41 = vld [vmem:[#allocation8 + $0x10] sm:$0xff]  ;;  %v413_v48 = vld [vmem:[#allocation13 + $0x58] sm:$0xff] }
  0x43   :  { %289 = vmatpush.msra.mxu3 %v177_v5  ;;  %434 = vmatpush.msrb.mxu1 %v432_v7  ;;  %v352_v42 = vld [vmem:[#allocation11 + $0x70] sm:$0xff]  ;;  %v414_v43 = vld [vmem:[#allocation13 + $0x60] sm:$0xff]  ;;  %v415_v44 = vld [vmem:[#allocation13 + $0x68] sm:$0xff] }
  0x44   :  { %319 = vmatpush.msrb.mxu0 %v310_v63  ;;  %290 = vmatmul.f32.vlgmr.msra.gmra.mxu3 %v143_v4  ;;  %v298_v45 = vld [vmem:[#allocation8 + $0x8] sm:$0xff]  ;;  %v412_v47 = vld [vmem:[#allocation13 + $0x50] sm:$0xff]  ;;  %v297_v49 = vld [vmem:[#allocation8] sm:$0xff] }
  0x45   :  { %454 = vmatpush.msrb.mxu2 %v433_v8  ;;  %474 = vmatpush.msrb.mxu3 %v368_v10  ;;  %v350_v46 = vld [vmem:[#allocation11 + $0x60] sm:$0xff]  ;;  %v348_v50 = vld [vmem:[#allocation11 + $0x50] sm:$0xff]  ;;  %v411_v53 = vld [vmem:[#allocation13 + $0x48] sm:$0xff] }
  0x46   :  { %320 = vmatpush.msrb.mxu0 %v309_v3  ;;  %435 = vmatpush.msrb.mxu1 %v430_v11  ;;  %v296_v51 = vld [vmem:[#allocation5] sm:$0xff]  ;;  %v410_v52 = vld [vmem:[#allocation13 + $0x40] sm:$0xff]  ;;  %v407_v60 = vld [vmem:[#allocation13 + $0x28] sm:$0xff] }
  0x47   :  { %455 = vmatpush.msrb.mxu2 %v431_v12  ;;  %475 = vmatpush.msrb.mxu3 %v366_v14  ;;  %v400_v54 = vld [vmem:[#allocation11 + $0x1f0] sm:$0xff]  ;;  %v346_v56 = vld [vmem:[#allocation11 + $0x40] sm:$0xff]  ;;  %v409_v57 = vld [vmem:[#allocation13 + $0x38] sm:$0xff] }
  0x48   :  { %321 = vmatpush.msrb.mxu0 %v308_v6  ;;  %436 = vmatpush.msrb.mxu1 %v428_v15  ;;  %v408_v55 = vld [vmem:[#allocation13 + $0x30] sm:$0xff]  ;;  %v398_v58 = vld [vmem:[#allocation11 + $0x1e0] sm:$0xff]  ;;  %v405_v63 = vld [vmem:[#allocation13 + $0x18] sm:$0xff] }
  0x49   :  { %456 = vmatpush.msrb.mxu2 %v429_v16  ;;  %476 = vmatpush.msrb.mxu3 %v364_v18  ;;  %v406_v59 = vld [vmem:[#allocation13 + $0x20] sm:$0xff]  ;;  %v396_v61 = vld [vmem:[#allocation11 + $0x1d0] sm:$0xff]  ;;  %v403_v2 = vld [vmem:[#allocation13 + $0x8] sm:$0xff] }
  0x4a   :  { %322 = vmatpush.msrb.mxu0 %v307_v9  ;;  %437 = vmatpush.msrb.mxu1 %v426_v19  ;;  %v404_v62 = vld [vmem:[#allocation13 + $0x10] sm:$0xff]  ;;  %v394_v0 = vld [vmem:[#allocation11 + $0x1c0] sm:$0xff]  ;;  %v369_v3 = vld [vmem:[#allocation11 + $0xf8] sm:$0xff] }
  0x4b   :  { %457 = vmatpush.msrb.mxu2 %v427_v20  ;;  %477 = vmatpush.msrb.mxu3 %v362_v22  ;;  %v402_v1 = vld [vmem:[#allocation13] sm:$0xff]  ;;  %v401_v4 = vld [vmem:[#allocation11 + $0x1f8] sm:$0xff]  ;;  %v392_v5 = vld [vmem:[#allocation11 + $0x1b0] sm:$0xff] }
  0x4c   :  { %323 = vmatpush.msrb.mxu0 %v306_v13  ;;  %438 = vmatpush.msrb.mxu1 %v424_v23  ;;  %v367_v6 = vld [vmem:[#allocation11 + $0xe8] sm:$0xff]  ;;  %v390_v8 = vld [vmem:[#allocation11 + $0x1a0] sm:$0xff]  ;;  %v365_v9 = vld [vmem:[#allocation11 + $0xd8] sm:$0xff] }
  0x4d   :  { %458 = vmatpush.msrb.mxu2 %v425_v24  ;;  %478 = vmatpush.msrb.mxu3 %v360_v26  ;;  %v399_v7 = vld [vmem:[#allocation11 + $0x1e8] sm:$0xff]  ;;  %v397_v10 = vld [vmem:[#allocation11 + $0x1d8] sm:$0xff]  ;;  %v388_v11 = vld [vmem:[#allocation11 + $0x190] sm:$0xff] }
  0x4e   :  { %324 = vmatpush.msrb.mxu0 %v305_v17  ;;  %439 = vmatpush.msrb.mxu1 %v422_v27  ;;  %v363_v12 = vld [vmem:[#allocation11 + $0xc8] sm:$0xff]  ;;  %v386_v14 = vld [vmem:[#allocation11 + $0x180] sm:$0xff]  ;;  %v361_v15 = vld [vmem:[#allocation11 + $0xb8] sm:$0xff] }
  0x4f   :  { %459 = vmatpush.msrb.mxu2 %v423_v28  ;;  %479 = vmatpush.msrb.mxu3 %v358_v30  ;;  %v395_v13 = vld [vmem:[#allocation11 + $0x1c8] sm:$0xff]  ;;  %v393_v16 = vld [vmem:[#allocation11 + $0x1b8] sm:$0xff]  ;;  %v344_v17 = vld [vmem:[#allocation11 + $0x30] sm:$0xff] }
  0x50   :  { %325 = vmatpush.msrb.mxu0 %v304_v21  ;;  %440 = vmatpush.msrb.mxu1 %v420_v31  ;;  %v384_v18 = vld [vmem:[#allocation11 + $0x170] sm:$0xff]  ;;  %v359_v19 = vld [vmem:[#allocation11 + $0xa8] sm:$0xff]  ;;  %v342_v21 = vld [vmem:[#allocation11 + $0x20] sm:$0xff] }
  0x51   :  { %460 = vmatpush.msrb.mxu2 %v421_v32  ;;  %480 = vmatpush.msrb.mxu3 %v356_v34  ;;  %v391_v20 = vld [vmem:[#allocation11 + $0x1a8] sm:$0xff]  ;;  %v382_v22 = vld [vmem:[#allocation11 + $0x160] sm:$0xff]  ;;  %v357_v23 = vld [vmem:[#allocation11 + $0x98] sm:$0xff] }
  0x52   :  { %326 = vmatpush.msrb.mxu0 %v303_v25  ;;  %441 = vmatpush.msrb.mxu1 %v418_v35  ;;  %v389_v24 = vld [vmem:[#allocation11 + $0x198] sm:$0xff]  ;;  %v340_v25 = vld [vmem:[#allocation11 + $0x10] sm:$0xff]  ;;  %v355_v27 = vld [vmem:[#allocation11 + $0x88] sm:$0xff] }
  0x53   :  { %461 = vmatpush.msrb.mxu2 %v419_v36  ;;  %481 = vmatpush.msrb.mxu3 %v354_v38  ;;  %v380_v26 = vld [vmem:[#allocation11 + $0x150] sm:$0xff]  ;;  %v387_v28 = vld [vmem:[#allocation11 + $0x188] sm:$0xff]  ;;  %v378_v30 = vld [vmem:[#allocation11 + $0x140] sm:$0xff] }
  0x54   :  { %327 = vmatpush.msrb.mxu0 %v302_v29  ;;  %442 = vmatpush.msrb.mxu1 %v416_v39  ;;  %v338_v29 = vld [vmem:[#allocation11] sm:$0xff]  ;;  %v353_v31 = vld [vmem:[#allocation11 + $0x78] sm:$0xff]  ;;  %v376_v34 = vld [vmem:[#allocation11 + $0x130] sm:$0xff] }
  0x55   :  { %462 = vmatpush.msrb.mxu2 %v417_v40  ;;  %482 = vmatpush.msrb.mxu3 %v352_v42  ;;  %v385_v32 = vld [vmem:[#allocation11 + $0x178] sm:$0xff]  ;;  %v351_v35 = vld [vmem:[#allocation11 + $0x68] sm:$0xff]  ;;  %v374_v38 = vld [vmem:[#allocation11 + $0x120] sm:$0xff] }
  0x56   :  { %328 = vmatpush.msrb.mxu0 %v301_v33  ;;  %443 = vmatpush.msrb.mxu1 %v414_v43  ;;  %v208_v33 = vld [vmem:[%s964_s3] sm:$0x3]  ;;  %v383_v36 = vld [vmem:[#allocation11 + $0x168] sm:$0xff]  ;;  %v349_v39 = vld [vmem:[#allocation11 + $0x58] sm:$0xff] }
  0x57   :  { %463 = vmatpush.msrb.mxu2 %v415_v44  ;;  %483 = vmatpush.msrb.mxu3 %v350_v46  ;;  %v381_v40 = vld [vmem:[#allocation11 + $0x158] sm:$0xff]  ;;  %v347_v42 = vld [vmem:[#allocation11 + $0x48] sm:$0xff]  ;;  %v370_v46 = vld [vmem:[#allocation11 + $0x100] sm:$0xff] }
  0x58   :  { %329 = vmatpush.msrb.mxu0 %v300_v37  ;;  %444 = vmatpush.msrb.mxu1 %v412_v47  ;;  %v210_v37 = vperm.slane %v208_v33, 0  ;;  %v379_v43 = vld [vmem:[#allocation11 + $0x148] sm:$0xff]  ;;  %v345_v47 = vld [vmem:[#allocation11 + $0x38] sm:$0xff] }
  0x59   :  { %464 = vmatpush.msrb.mxu2 %v413_v48  ;;  %484 = vmatpush.msrb.mxu3 %v348_v50  ;;  %v377_v48 = vld [vmem:[#allocation11 + $0x138] sm:$0xff]  ;;  %v375_v50 = vld [vmem:[#allocation11 + $0x128] sm:$0xff] }
  0x5a   :  { %330 = vmatpush.msrb.mxu0 %v299_v41  ;;  %445 = vmatpush.msrb.mxu1 %v410_v52  ;;  %v372_v41 = vld [vmem:[#allocation11 + $0x110] sm:$0xff]  ;;  %v341_v52 = vld [vmem:[#allocation11 + $0x18] sm:$0xff] }
  0x5b   :  { %465 = vmatpush.msrb.mxu2 %v411_v53  ;;  %485 = vmatpush.msrb.mxu3 %v346_v56 }
  0x5c   :  { %331 = vmatpush.msrb.mxu0 %v298_v45  ;;  %446 = vmatpush.msrb.mxu1 %v408_v55  ;;  %v339_v55 = vld [vmem:[#allocation11 + $0x8] sm:$0xff] }
  0x5d   :  { %466 = vmatpush.msrb.mxu2 %v409_v57  ;;  %486 = vmatpush.msrb.mxu3 %v344_v17  ;;  %v371_v57 = vld [vmem:[#allocation11 + $0x108] sm:$0xff] }
  0x5e   :  { %332 = vmatpush.msrb.mxu0 %v297_v49  ;;  %447 = vmatpush.msrb.mxu1 %v406_v59  ;;  %v343_v49 = vld [vmem:[#allocation11 + $0x28] sm:$0xff] }
  0x5f   :  { %333 = vmatmul.f32.vlgmr.msrb.gmra.mxu0 %v296_v51  ;;  %467 = vmatpush.msrb.mxu2 %v407_v60 }
  0x60   :  { %494 = vmatpush.msra.mxu0 %v400_v54  ;;  %448 = vmatpush.msrb.mxu1 %v404_v62  ;;  %v373_v54 = vld [vmem:[#allocation11 + $0x118] sm:$0xff] }
  0x61   :  { %468 = vmatpush.msrb.mxu2 %v405_v63  ;;  %487 = vmatpush.msrb.mxu3 %v342_v21 }
  0x62   :  { %495 = vmatpush.msra.mxu0 %v398_v58  ;;  %449 = vmatpush.msrb.mxu1 %v402_v1  ;;  %v211_v58 = vperm.slane %v208_v33, 1 }
  0x63   :  { %469 = vmatpush.msrb.mxu2 %v403_v2  ;;  %488 = vmatpush.msrb.mxu3 %v340_v25 }
  0x64   :  { %496 = vmatpush.msra.mxu0 %v396_v61  ;;  %514 = vmatpush.msra.mxu1 %v369_v3 }
  0x65   :  { %534 = vmatpush.msra.mxu2 %v401_v4  ;;  %489 = vmatpush.msrb.mxu3 %v338_v29 }
  0x66   :  { %497 = vmatpush.msra.mxu0 %v394_v0  ;;  %515 = vmatpush.msra.mxu1 %v367_v6  ;;  %v645_v0 = vld [vmem:[#allocation10] ss:$0 sm:$0xff] }
  0x67   :  { %535 = vmatpush.msra.mxu2 %v399_v7 }
  0x68   :  { %498 = vmatpush.msra.mxu0 %v392_v5  ;;  %516 = vmatpush.msra.mxu1 %v365_v9 }
  0x69   :  { %536 = vmatpush.msra.mxu2 %v397_v10  ;;  %v554_v10 = vld [vmem:[%s969_s8] sm:$0x3] }
  0x6a   :  { %499 = vmatpush.msra.mxu0 %v390_v8  ;;  %517 = vmatpush.msra.mxu1 %v363_v12 }
  0x6b   :  { %537 = vmatpush.msra.mxu2 %v395_v13  ;;  %v556_v13 = vperm.slane %v554_v10, 0 }
  0x6c   :  { %500 = vmatpush.msra.mxu0 %v388_v11  ;;  %518 = vmatpush.msra.mxu1 %v361_v15 }
  0x6d   :  { %538 = vmatpush.msra.mxu2 %v393_v16 }
  0x6e   :  { %501 = vmatpush.msra.mxu0 %v386_v14  ;;  %519 = vmatpush.msra.mxu1 %v359_v19  ;;  %v557_v14 = vperm.slane %v554_v10, 1 }
  0x6f   :  { %539 = vmatpush.msra.mxu2 %v391_v20  ;;  %v863_v20 = vmov 256.0  }
  0x70   :  { %502 = vmatpush.msra.mxu0 %v384_v18  ;;  %520 = vmatpush.msra.mxu1 %v357_v23  ;;  %646 = vrcp.f32 %v863_v20 }
  0x71   :  { %540 = vmatpush.msra.mxu2 %v389_v24 }
  0x72   :  { %503 = vmatpush.msra.mxu0 %v382_v22  ;;  %521 = vmatpush.msra.mxu1 %v355_v27 }
  0x73   :  { %541 = vmatpush.msra.mxu2 %v387_v28 }
  0x74   :  { %504 = vmatpush.msra.mxu0 %v380_v26  ;;  %522 = vmatpush.msra.mxu1 %v353_v31 }
  0x75   :  { %542 = vmatpush.msra.mxu2 %v385_v32 }
  0x76   :  { %505 = vmatpush.msra.mxu0 %v378_v30  ;;  %523 = vmatpush.msra.mxu1 %v351_v35  ;;  %v647_v21 = vpop.eup %646 }
  0x77   :  { %543 = vmatpush.msra.mxu2 %v383_v36  ;;  %v566_v22 = vmul.f32 256.0, %v647_v21  ;;  %vm570_vm0 = vweird.f32 %v647_v21 }
  0x78   :  { %506 = vmatpush.msra.mxu0 %v376_v34  ;;  %524 = vmatpush.msra.mxu1 %v349_v39 }
  0x79   :  { %544 = vmatpush.msra.mxu2 %v381_v40  ;;  %v567_v23 = vsub.f32 1.0, %v566_v22 }
  0x7a   :  { %507 = vmatpush.msra.mxu0 %v374_v38  ;;  %525 = vmatpush.msra.mxu1 %v347_v42  ;;  %v594_v42 = vld [vmem:[%s970_s9] sm:$0x3] }
  0x7b   :  { %545 = vmatpush.msra.mxu2 %v379_v43  ;;  %v568_v24 = vmul.f32 %v647_v21, %v567_v23 }
  0x7c   :  { %508 = vmatpush.msra.mxu0 %v372_v41  ;;  %526 = vmatpush.msra.mxu1 %v345_v47 }
  0x7d   :  { %546 = vmatpush.msra.mxu2 %v377_v48  ;;  %v569_v25 = vadd.f32 %v647_v21, %v568_v24 }
  0x7e   :  { %509 = vmatpush.msra.mxu0 %v370_v46  ;;  %527 = vmatpush.msra.mxu1 %v343_v49  ;;  %v597_v46 = vperm.slane %v594_v42, 1 }
  0x7f   :  { %547 = vmatpush.msra.mxu2 %v375_v50  ;;  %v571_v26 = vsel %vm570_vm0, %v647_v21, %v569_v25 }
  0x80   :  { %528 = vmatpush.msra.mxu1 %v341_v52 }
  0x81   :  { %548 = vmatpush.msra.mxu2 %v373_v54 }
  0x82   :  { %529 = vmatpush.msra.mxu1 %v339_v55 }
  0x83   :  { %549 = vmatpush.msra.mxu2 %v371_v57 }
  0xbc   :  { %v231_v44 = vpop.f32.mrf.mxu0 }
  0xbd   :  { %v232_v45 = vadd.f32 %v231_v44, %v210_v37  ;;  %v602_v44 = vld [vmem:[%s971_s10] sm:$0x3] }
  0xbe   :  { %v251_v51 = vpop.f32.mrf.mxu1  ;;  %v604_v50 = vperm.slane %v602_v44, 0 }
  0xbf   :  { %v252_v53 = vadd.f32 %v251_v51, %v232_v45  ;;  %v596_v45 = vperm.slane %v594_v42, 0  ;;  %v605_v51 = vperm.slane %v602_v44, 1 }
  0xc1   :  { %v294_v56 = vmax.f32 %v252_v53, 0.0 }
  0xc3   :  { %490 = vmatmul.f32.vlgmr.msrb.gmra.mxu3 %v294_v56 }
  0xc5   :  { %v271_v59 = vpop.f32.mrf.mxu2 }
  0xc6   :  { %v272_v60 = vadd.f32 %v271_v59, %v211_v58 }
  0xc7   :  { %v291_v61 = vpop.f32.mrf.mxu3 }
  0xc8   :  { %v292_v62 = vadd.f32 %v291_v61, %v272_v60 }
  0xca   :  { %v295_v63 = vmax.f32 %v292_v62, 0.0 }
  0xcc   :  { %510 = vmatmul.f32.vlgmr.msra.gmra.mxu0 %v295_v63 }
  0xdc   :  { %v334_v1 = vpop.f32.mrf.mxu0 }
  0xdd   :  { %v335_v2 = vadd.f32 %v645_v0, %v334_v1 }
  0xdf   :  { %v337_v3 = vmax.f32 %v335_v2, 0.0 }
  0xe1   :  { %450 = vmatmul.f32.vlgmr.msrb.gmra.mxu1 %v337_v3  ;;  %470 = vmatmul.f32.vlgmr.msrb.gmra.mxu2 %v337_v3 }
  0xe9   :  { %530 = vmatmul.f32.vlgmr.msra.gmra.mxu1 %v294_v56  ;;  %550 = vmatmul.f32.vlgmr.msra.gmra.mxu2 %v295_v63 }
 0x146   :  { %v491_v5 = vpop.f32.mrf.mxu3 }
 0x149   :  { %v511_v8 = vpop.f32.mrf.mxu0 }
 0x15e   :  { %v451_v4 = vpop.f32.mrf.mxu1 }
 0x15f   :  { %v492_v7 = vadd.f32 %v491_v5, %v451_v4 }
 0x161   :  { %v512_v11 = vadd.f32 %v511_v8, %v492_v7 }
 0x163   :  { %v560_v17 = vadd.f32 %v556_v13, %v512_v11 }
 0x164   :  { %v471_v6 = vpop.f32.mrf.mxu2 }
 0x166   :  { %v531_v9 = vpop.f32.mrf.mxu1 }
 0x167   :  { %v532_v12 = vadd.f32 %v531_v9, %v471_v6 }
 0x16c   :  { %v551_v15 = vpop.f32.mrf.mxu2 }
 0x16d   :  { %v552_v16 = vadd.f32 %v551_v15, %v532_v12 }
 0x16f   :  { %v561_v18 = vadd.f32 %v557_v14, %v552_v16 }
 0x171   :  { %v562_v19 = vadd.f32 %v561_v18, %v560_v17 }
 0x173   :  { %563 = vadd.xlane.f32.xlu0 %v562_v19 }
 0x1e6   :  { %v564_v27 = vpop.xlane.xlu0 %563 }
 0x1e7   :  { %v572_v28 = vmul.f32 %v571_v26, %v564_v27 }
 0x1e9   :  { %v573_v29 = vsub.f32 %v560_v17, %v572_v28  ;;  %v574_v30 = vsub.f32 %v561_v18, %v572_v28 }
 0x1eb   :  { %v575_v31 = vmul.f32 %v573_v29, %v573_v29  ;;  %v576_v32 = vmul.f32 %v574_v30, %v574_v30 }
 0x1ed   :  { %v577_v33 = vadd.f32 %v576_v32, %v575_v31 }
 0x1ef   :  { %578 = vadd.xlane.f32.xlu0 %v577_v33 }
 0x262   :  { %v579_v34 = vpop.xlane.xlu0 %578 }
 0x263   :  { %v580_v35 = vmul.f32 %v579_v34, %v571_v26 }
 0x265   :  { %v581_v36 = vadd.f32 1e-05, %v580_v35 }
 0x267   :  { %648 = vrsqrt.f32 %v581_v36  ;;  %vm588_vm2 = vweird.f32 %v581_v36 }
 0x26d   :  { %v649_v37 = vpop.eup %648 }
 0x26e   :  { %v583_v38 = vmul.f32 %v649_v37, %v581_v36  ;;  %vm589_vm1 = vweird.f32 %v649_v37 }
 0x26f   :  { %vm590_vm3 = vmor %vm588_vm2, %vm589_vm1 }
 0x270   :  { %v584_v39 = vmul.f32 %v649_v37, %v583_v38 }
 0x272   :  { %v585_v40 = vmul.f32 0.5, %v584_v39 }
 0x274   :  { %v586_v41 = vsub.f32 1.5, %v585_v40 }
 0x276   :  { %v587_v43 = vmul.f32 %v649_v37, %v586_v41 }
 0x278   :  { %v591_v47 = vsel %vm590_vm3, %v649_v37, %v587_v43 }
 0x279   :  { %v592_v48 = vmul.f32 %v591_v47, %v573_v29  ;;  %v593_v49 = vmul.f32 %v591_v47, %v574_v30 }
 0x27b   :  { %v600_v52 = vmul.f32 %v596_v45, %v592_v48  ;;  %v601_v53 = vmul.f32 %v597_v46, %v593_v49 }
 0x27d   :  { %v608_v54 = vadd.f32 %v604_v50, %v600_v52  ;;  %v609_v55 = vadd.f32 %v605_v51, %v601_v53 }
 0x27f   :  { %610 = vst [vmem:[#allocation14] sm:$0xff] %v608_v54 }
 0x280   :  { %611 = vst [vmem:[#allocation14 + $0x8] sm:$0xff] %v609_v55 }
 0x281   :  { %622 = dma.vmem_to_hbm [thread:$0]  %s618_s16, 256, %s620_s18, [#allocation4]  }
 0x282   :  { %850 = dma.done.wait [#allocation4], 256  }
 0x283   :  { %851 = vsyncadd [#allocation4], 4294967040 }
 0x284   :  { %627 = vsyncpa [#allocation3], 1 }
 0x285   :  { %628 = vsyncpa [#allocation6], 1 }
 0x286   :  { %629 = vsyncpa [#allocation9], 1 }
 0x287   :  { %630 = vsyncpa [#allocation12], 1 }
 0x288   :  { %631 = vsyncpa [#allocation4], 1 }

// kernel: tpu_custom_call.1
= control target key start
LH: loop header
LB: loop body
LE: loop exit
PB: predicated region body
PF: predicated region fallthrough
CT: control target
= control target key end

     0   :  { %16 = vsyncpa [#allocation3], 0  ;;  %s961_s0 = inlined_call_operand.hbm [shape: f32[8,256], index: 0, kind: input, shape index: {}]   ;;  %s962_s1 = inlined_call_operand.hbm [shape: f32[8,128], index: 1, kind: input, shape index: {}]   ;;  %s963_s2 = inlined_call_operand.hbm [shape: f32[256,256], index: 2, kind: input, shape index: {}]   ;;  %s964_s3 = inlined_call_operand.vmem [shape: f32[1,256], index: 3, kind: input, shape index: {}]   ;;  %s965_s4 = inlined_call_operand.hbm [shape: f32[128,128], index: 4, kind: input, shape index: {}]   ;;  %s966_s5 = inlined_call_operand.hbm [shape: f32[1,128], index: 5, kind: input, shape index: {}]   ;;  %s967_s6 = inlined_call_operand.hbm [shape: f32[256,256], index: 6, kind: input, shape index: {}]   ;;  %s968_s7 = inlined_call_operand.hbm [shape: f32[128,256], index: 7, kind: input, shape index: {}]   ;;  %s969_s8 = inlined_call_operand.vmem [shape: f32[1,256], index: 8, kind: input, shape index: {}]   ;;  %s970_s9 = inlined_call_operand.vmem [shape: f32[1,256], index: 9, kind: input, shape index: {}]   ;;  %s971_s10 = inlined_call_operand.vmem [shape: f32[1,256], index: 10, kind: input, shape index: {}]   ;;  %s972_s11 = inlined_call_operand.hbm [shape: f32[8,256], index: 11, kind: output, shape index: {}]  }
   0x1   :  { %17 = vsyncpa [#allocation6], 0 }
   0x2   :  { %18 = vsyncpa [#allocation9], 0 }
   0x3   :  { %19 = vsyncpa [#allocation12], 0  ;;  %s37_s19 = sshll.u32 %s962_s1, 4  ;;  %s38_s19 = int_to_ptr.hbm [resolvable:$true] %s37_s19 }
   0x4   :  { %20 = vsyncpa [#allocation4], 0  ;;  %s852_s20 = smov [#allocation5]   ;;  %s62_s24 = sshll.u32 %s965_s4, 4  ;;  %s63_s24 = int_to_ptr.hbm [resolvable:$true] %s62_s24 }
   0x5   :  { %s39_s21 = sshll.u32 %s852_s20, 4  ;;  %s853_s25 = smov [#allocation8]   ;;  %s40_s21 = int_to_ptr.vmem [resolvable:$true] %s39_s21 }
   0x6   :  { %42 = dma.hbm_to_vmem [thread:$0]  %s38_s19, 128, %s40_s21, [#allocation6]  }
   0x7   :  { %s64_s26 = sshll.u32 %s853_s25, 4  ;;  %s854_s27 = smov 128   ;;  %s65_s26 = int_to_ptr.vmem [resolvable:$true] %s64_s26 }
   0x8   :  { %s855_s28 = smov 8   ;;  %s86_s1 = sshll.u32 %s967_s6, 4  ;;  %s87_s1 = int_to_ptr.hbm [resolvable:$true] %s86_s1 }
   0x9   :  { %70 = dma.hbm_to_vmem [thread:$0]  %s63_s24, 2048, %s65_s26, [#allocation9], %s854_s27, %s854_s27, %s855_s28  }
   0xa   :  { %s856_s12 = smov [#allocation11]   ;;  %s26_s4 = sshll.u32 %s961_s0, 4  ;;  %s27_s4 = int_to_ptr.hbm [resolvable:$true] %s26_s4 }
   0xb   :  { %s88_s13 = sshll.u32 %s856_s12, 4  ;;  %s857_s16 = smov 256   ;;  %s89_s13 = int_to_ptr.vmem [resolvable:$true] %s88_s13 }
   0xc   :  { %s858_s17 = smov 16   ;;  %s859_s18 = smov [#allocation2]  }
   0xd   :  { %94 = dma.hbm_to_vmem [thread:$0]  %s87_s1, 8192, %s89_s13, [#allocation12], %s857_s16, %s857_s16, %s858_s17  }
   0xe   :  { %s28_s19 = sshll.u32 %s859_s18, 4  ;;  %s47_s22 = sshll.u32 %s963_s2, 4  ;;  %s29_s19 = int_to_ptr.vmem [resolvable:$true] %s28_s19  ;;  %s48_s22 = int_to_ptr.hbm [resolvable:$true] %s47_s22 }
   0xf   :  { %31 = dma.hbm_to_vmem [thread:$0]  %s27_s4, 256, %s29_s19, [#allocation3]  }
  0x10   :  { %s76_s24 = sshll.u32 %s966_s5, 4  ;;  %s860_s25 = smov [#allocation7]   ;;  %s77_s24 = int_to_ptr.hbm [resolvable:$true] %s76_s24 }
  0x11   :  { %s49_s26 = sshll.u32 %s860_s25, 4  ;;  %s861_s0 = smov [#allocation10]   ;;  %s50_s26 = int_to_ptr.vmem [resolvable:$true] %s49_s26 }
  0x12   :  { %55 = dma.hbm_to_vmem [thread:$0]  %s48_s22, 8192, %s50_s26, [#allocation6], %s857_s16, %s857_s16, %s858_s17  }
  0x13   :  { %s78_s27 = sshll.u32 %s861_s0, 4  ;;  %s99_s30 = sshll.u32 %s968_s7, 4  ;;  %s79_s27 = int_to_ptr.vmem [resolvable:$true] %s78_s27  ;;  %s100_s30 = int_to_ptr.hbm [resolvable:$true] %s99_s30 }
  0x14   :  { %81 = dma.hbm_to_vmem [thread:$0]  %s77_s24, 16, %s79_s27, [#allocation9]  }
  0x15   :  { %s862_s2 = smov [#allocation13]  }
  0x16   :  { %s101_s1 = sshll.u32 %s862_s2, 4  ;;  %s102_s1 = int_to_ptr.vmem [resolvable:$true] %s101_s1 }
  0x17   :  { %107 = dma.hbm_to_vmem [thread:$0]  %s100_s30, 4096, %s102_s1, [#allocation12], %s857_s16, %s857_s16, %s858_s17  }
  0x18   :  { %842 = dma.done.wait [#allocation3], 256  }
  0x19   :  { %843 = vsyncadd [#allocation3], 4294967040 }
  0x1a   :  { %844 = dma.done.wait [#allocation6], 8320  }
  0x1b   :  { %845 = vsyncadd [#allocation6], 4294958976 }
  0x1c   :  { %846 = dma.done.wait [#allocation9], 2064  }
  0x1d   :  { %847 = vsyncadd [#allocation9], 4294965232 }
  0x1e   :  { %848 = dma.done.wait [#allocation12], 12288  }
  0x1f   :  { %849 = vsyncadd [#allocation12], 4294955008  ;;  %v174_v0 = vld [vmem:[#allocation7 + $0xf0] sm:$0xff]  ;;  %v172_v1 = vld [vmem:[#allocation7 + $0xe0] sm:$0xff]  ;;  %s864_s4 = smov [#allocation14]   ;;  %s619_s18 = sshll.u32 %s972_s11, 4  ;;  %s620_s18 = int_to_ptr.hbm [resolvable:$true] %s619_s18 }
  0x20   :  { %214 = vmatpush.msra.mxu0 %v174_v0  ;;  %v170_v2 = vld [vmem:[#allocation7 + $0xd0] sm:$0xff]  ;;  %v168_v3 = vld [vmem:[#allocation7 + $0xc0] sm:$0xff]  ;;  %v175_v5 = vld [vmem:[#allocation7 + $0xf8] sm:$0xff]  ;;  %s617_s16 = sshll.u32 %s864_s4, 4  ;;  %s618_s16 = int_to_ptr.vmem [resolvable:$true] %s617_s16 }
  0x21   :  { %v206_v4 = vld [vmem:[#allocation7 + $0x1f0] sm:$0xff]  ;;  %v204_v6 = vld [vmem:[#allocation7 + $0x1e0] sm:$0xff]  ;;  %v173_v7 = vld [vmem:[#allocation7 + $0xe8] sm:$0xff]  ;;  %254 = vmatpush.msra.mxu2 %v175_v5 }
  0x22   :  { %215 = vmatpush.msra.mxu0 %v172_v1  ;;  %234 = vmatpush.msra.mxu1 %v206_v4  ;;  %v166_v8 = vld [vmem:[#allocation7 + $0xb0] sm:$0xff]  ;;  %v207_v9 = vld [vmem:[#allocation7 + $0x1f8] sm:$0xff]  ;;  %v205_v12 = vld [vmem:[#allocation7 + $0x1e8] sm:$0xff] }
  0x23   :  { %v202_v10 = vld [vmem:[#allocation7 + $0x1d0] sm:$0xff]  ;;  %v171_v11 = vld [vmem:[#allocation7 + $0xd8] sm:$0xff]  ;;  %v164_v13 = vld [vmem:[#allocation7 + $0xa0] sm:$0xff]  ;;  %255 = vmatpush.msra.mxu2 %v173_v7  ;;  %274 = vmatpush.msra.mxu3 %v207_v9 }
  0x24   :  { %216 = vmatpush.msra.mxu0 %v170_v2  ;;  %235 = vmatpush.msra.mxu1 %v204_v6  ;;  %v200_v14 = vld [vmem:[#allocation7 + $0x1c0] sm:$0xff]  ;;  %v169_v15 = vld [vmem:[#allocation7 + $0xc8] sm:$0xff]  ;;  %v203_v16 = vld [vmem:[#allocation7 + $0x1d8] sm:$0xff] }
  0x25   :  { %v162_v17 = vld [vmem:[#allocation7 + $0x90] sm:$0xff]  ;;  %256 = vmatpush.msra.mxu2 %v171_v11  ;;  %275 = vmatpush.msra.mxu3 %v205_v12  ;;  %v167_v19 = vld [vmem:[#allocation7 + $0xb8] sm:$0xff]  ;;  %v201_v20 = vld [vmem:[#allocation7 + $0x1c8] sm:$0xff] }
  0x26   :  { %217 = vmatpush.msra.mxu0 %v168_v3  ;;  %236 = vmatpush.msra.mxu1 %v202_v10  ;;  %v198_v18 = vld [vmem:[#allocation7 + $0x1b0] sm:$0xff]  ;;  %v160_v21 = vld [vmem:[#allocation7 + $0x80] sm:$0xff]  ;;  %v165_v23 = vld [vmem:[#allocation7 + $0xa8] sm:$0xff] }
  0x27   :  { %257 = vmatpush.msra.mxu2 %v169_v15  ;;  %276 = vmatpush.msra.mxu3 %v203_v16  ;;  %v196_v22 = vld [vmem:[#allocation7 + $0x1a0] sm:$0xff]  ;;  %v199_v24 = vld [vmem:[#allocation7 + $0x1b8] sm:$0xff]  ;;  %v158_v25 = vld [vmem:[#allocation7 + $0x70] sm:$0xff] }
  0x28   :  { %218 = vmatpush.msra.mxu0 %v166_v8  ;;  %237 = vmatpush.msra.mxu1 %v200_v14  ;;  %v194_v26 = vld [vmem:[#allocation7 + $0x190] sm:$0xff]  ;;  %v163_v27 = vld [vmem:[#allocation7 + $0x98] sm:$0xff]  ;;  %v197_v28 = vld [vmem:[#allocation7 + $0x1a8] sm:$0xff] }
  0x29   :  { %258 = vmatpush.msra.mxu2 %v167_v19  ;;  %277 = vmatpush.msra.mxu3 %v201_v20  ;;  %v156_v29 = vld [vmem:[#allocation7 + $0x60] sm:$0xff]  ;;  %v161_v31 = vld [vmem:[#allocation7 + $0x88] sm:$0xff]  ;;  %v195_v32 = vld [vmem:[#allocation7 + $0x198] sm:$0xff] }
  0x2a   :  { %219 = vmatpush.msra.mxu0 %v164_v13  ;;  %238 = vmatpush.msra.mxu1 %v198_v18  ;;  %v192_v30 = vld [vmem:[#allocation7 + $0x180] sm:$0xff]  ;;  %v154_v33 = vld [vmem:[#allocation7 + $0x50] sm:$0xff]  ;;  %v159_v35 = vld [vmem:[#allocation7 + $0x78] sm:$0xff] }
  0x2b   :  { %259 = vmatpush.msra.mxu2 %v165_v23  ;;  %278 = vmatpush.msra.mxu3 %v199_v24  ;;  %v190_v34 = vld [vmem:[#allocation7 + $0x170] sm:$0xff]  ;;  %v193_v36 = vld [vmem:[#allocation7 + $0x188] sm:$0xff]  ;;  %v152_v37 = vld [vmem:[#allocation7 + $0x40] sm:$0xff] }
  0x2c   :  { %220 = vmatpush.msra.mxu0 %v162_v17  ;;  %239 = vmatpush.msra.mxu1 %v196_v22  ;;  %v188_v38 = vld [vmem:[#allocation7 + $0x160] sm:$0xff]  ;;  %v157_v39 = vld [vmem:[#allocation7 + $0x68] sm:$0xff]  ;;  %v191_v40 = vld [vmem:[#allocation7 + $0x178] sm:$0xff] }
  0x2d   :  { %260 = vmatpush.msra.mxu2 %v163_v27  ;;  %279 = vmatpush.msra.mxu3 %v197_v28  ;;  %v150_v41 = vld [vmem:[#allocation7 + $0x30] sm:$0xff]  ;;  %v155_v43 = vld [vmem:[#allocation7 + $0x58] sm:$0xff]  ;;  %v189_v44 = vld [vmem:[#allocation7 + $0x168] sm:$0xff] }
  0x2e   :  { %221 = vmatpush.msra.mxu0 %v160_v21  ;;  %240 = vmatpush.msra.mxu1 %v194_v26  ;;  %v186_v42 = vld [vmem:[#allocation7 + $0x150] sm:$0xff]  ;;  %v148_v45 = vld [vmem:[#allocation7 + $0x20] sm:$0xff]  ;;  %v153_v47 = vld [vmem:[#allocation7 + $0x48] sm:$0xff] }
  0x2f   :  { %261 = vmatpush.msra.mxu2 %v161_v31  ;;  %280 = vmatpush.msra.mxu3 %v195_v32  ;;  %v184_v46 = vld [vmem:[#allocation7 + $0x140] sm:$0xff]  ;;  %v187_v48 = vld [vmem:[#allocation7 + $0x158] sm:$0xff]  ;;  %v146_v49 = vld [vmem:[#allocation7 + $0x10] sm:$0xff] }
  0x30   :  { %222 = vmatpush.msra.mxu0 %v158_v25  ;;  %241 = vmatpush.msra.mxu1 %v192_v30  ;;  %v182_v50 = vld [vmem:[#allocation7 + $0x130] sm:$0xff]  ;;  %v151_v51 = vld [vmem:[#allocation7 + $0x38] sm:$0xff]  ;;  %v185_v52 = vld [vmem:[#allocation7 + $0x148] sm:$0xff] }
  0x31   :  { %262 = vmatpush.msra.mxu2 %v159_v35  ;;  %281 = vmatpush.msra.mxu3 %v193_v36  ;;  %v144_v53 = vld [vmem:[#allocation7] sm:$0xff]  ;;  %v312_v55 = vld [vmem:[#allocation8 + $0x78] sm:$0xff]  ;;  %v149_v56 = vld [vmem:[#allocation7 + $0x28] sm:$0xff] }
  0x32   :  { %223 = vmatpush.msra.mxu0 %v156_v29  ;;  %242 = vmatpush.msra.mxu1 %v190_v34  ;;  %v180_v54 = vld [vmem:[#allocation7 + $0x120] sm:$0xff]  ;;  %v183_v57 = vld [vmem:[#allocation7 + $0x138] sm:$0xff]  ;;  %v178_v58 = vld [vmem:[#allocation7 + $0x110] sm:$0xff] }
  0x33   :  { %263 = vmatpush.msra.mxu2 %v157_v39  ;;  %282 = vmatpush.msra.mxu3 %v191_v40  ;;  %v311_v59 = vld [vmem:[#allocation8 + $0x70] sm:$0xff]  ;;  %v147_v60 = vld [vmem:[#allocation7 + $0x18] sm:$0xff]  ;;  %v181_v61 = vld [vmem:[#allocation7 + $0x128] sm:$0xff] }
  0x34   :  { %224 = vmatpush.msra.mxu0 %v154_v33  ;;  %243 = vmatpush.msra.mxu1 %v188_v38  ;;  %v142_v62 = vld [vmem:[#allocation2] sm:$0xff]  ;;  %v176_v0 = vld [vmem:[#allocation7 + $0x100] sm:$0xff]  ;;  %v179_v2 = vld [vmem:[#allocation7 + $0x118] sm:$0xff] }
  0x35   :  { %264 = vmatpush.msra.mxu2 %v155_v43  ;;  %283 = vmatpush.msra.mxu3 %v189_v44  ;;  %v310_v63 = vld [vmem:[#allocation8 + $0x68] sm:$0xff]  ;;  %v309_v3 = vld [vmem:[#allocation8 + $0x60] sm:$0xff]  ;;  %v143_v4 = vld [vmem:[#allocation2 + $0x8] sm:$0xff] }
  0x36   :  { %225 = vmatpush.msra.mxu0 %v152_v37  ;;  %244 = vmatpush.msra.mxu1 %v186_v42  ;;  %v145_v1 = vld [vmem:[#allocation7 + $0x8] sm:$0xff]  ;;  %v308_v6 = vld [vmem:[#allocation8 + $0x58] sm:$0xff]  ;;  %v307_v9 = vld [vmem:[#allocation8 + $0x50] sm:$0xff] }
  0x37   :  { %265 = vmatpush.msra.mxu2 %v153_v47  ;;  %284 = vmatpush.msra.mxu3 %v187_v48  ;;  %v177_v5 = vld [vmem:[#allocation7 + $0x108] sm:$0xff]  ;;  %v432_v7 = vld [vmem:[#allocation13 + $0xf0] sm:$0xff]  ;;  %v433_v8 = vld [vmem:[#allocation13 + $0xf8] sm:$0xff] }
  0x38   :  { %226 = vmatpush.msra.mxu0 %v150_v41  ;;  %245 = vmatpush.msra.mxu1 %v184_v46  ;;  %v368_v10 = vld [vmem:[#allocation11 + $0xf0] sm:$0xff]  ;;  %v430_v11 = vld [vmem:[#allocation13 + $0xe0] sm:$0xff]  ;;  %v431_v12 = vld [vmem:[#allocation13 + $0xe8] sm:$0xff] }
  0x39   :  { %266 = vmatpush.msra.mxu2 %v151_v51  ;;  %285 = vmatpush.msra.mxu3 %v185_v52  ;;  %v306_v13 = vld [vmem:[#allocation8 + $0x48] sm:$0xff]  ;;  %v428_v15 = vld [vmem:[#allocation13 + $0xd0] sm:$0xff]  ;;  %v429_v16 = vld [vmem:[#allocation13 + $0xd8] sm:$0xff] }
  0x3a   :  { %227 = vmatpush.msra.mxu0 %v148_v45  ;;  %246 = vmatpush.msra.mxu1 %v182_v50  ;;  %v366_v14 = vld [vmem:[#allocation11 + $0xe0] sm:$0xff]  ;;  %v364_v18 = vld [vmem:[#allocation11 + $0xd0] sm:$0xff]  ;;  %v427_v20 = vld [vmem:[#allocation13 + $0xc8] sm:$0xff] }
  0x3b   :  { %267 = vmatpush.msra.mxu2 %v149_v56  ;;  %286 = vmatpush.msra.mxu3 %v183_v57  ;;  %v305_v17 = vld [vmem:[#allocation8 + $0x40] sm:$0xff]  ;;  %v304_v21 = vld [vmem:[#allocation8 + $0x38] sm:$0xff]  ;;  %v303_v25 = vld [vmem:[#allocation8 + $0x30] sm:$0xff] }
  0x3c   :  { %228 = vmatpush.msra.mxu0 %v146_v49  ;;  %247 = vmatpush.msra.mxu1 %v180_v54  ;;  %v426_v19 = vld [vmem:[#allocation13 + $0xc0] sm:$0xff]  ;;  %v424_v23 = vld [vmem:[#allocation13 + $0xb0] sm:$0xff]  ;;  %v425_v24 = vld [vmem:[#allocation13 + $0xb8] sm:$0xff] }
  0x3d   :  { %268 = vmatpush.msra.mxu2 %v147_v60  ;;  %287 = vmatpush.msra.mxu3 %v181_v61  ;;  %v362_v22 = vld [vmem:[#allocation11 + $0xc0] sm:$0xff]  ;;  %v360_v26 = vld [vmem:[#allocation11 + $0xb0] sm:$0xff]  ;;  %v423_v28 = vld [vmem:[#allocation13 + $0xa8] sm:$0xff] }
  0x3e   :  { %229 = vmatpush.msra.mxu0 %v144_v53  ;;  %248 = vmatpush.msra.mxu1 %v178_v58  ;;  %v422_v27 = vld [vmem:[#allocation13 + $0xa0] sm:$0xff]  ;;  %v420_v31 = vld [vmem:[#allocation13 + $0x90] sm:$0xff]  ;;  %v421_v32 = vld [vmem:[#allocation13 + $0x98] sm:$0xff] }
  0x3f   :  { %230 = vmatmul.f32.vlgmr.msra.gmra.mxu0 %v142_v62  ;;  %269 = vmatpush.msra.mxu2 %v145_v1  ;;  %v302_v29 = vld [vmem:[#allocation8 + $0x28] sm:$0xff]  ;;  %v301_v33 = vld [vmem:[#allocation8 + $0x20] sm:$0xff]  ;;  %v356_v34 = vld [vmem:[#allocation11 + $0x90] sm:$0xff] }
  0x40   :  { %317 = vmatpush.msrb.mxu0 %v312_v55  ;;  %249 = vmatpush.msra.mxu1 %v176_v0  ;;  %v358_v30 = vld [vmem:[#allocation11 + $0xa0] sm:$0xff]  ;;  %v419_v36 = vld [vmem:[#allocation13 + $0x88] sm:$0xff]  ;;  %v300_v37 = vld [vmem:[#allocation8 + $0x18] sm:$0xff] }
  0x41   :  { %288 = vmatpush.msra.mxu3 %v179_v2  ;;  %250 = vmatmul.f32.vlgmr.msra.gmra.mxu1 %v143_v4  ;;  %v418_v35 = vld [vmem:[#allocation13 + $0x80] sm:$0xff]  ;;  %v416_v39 = vld [vmem:[#allocation13 + $0x70] sm:$0xff]  ;;  %v417_v40 = vld [vmem:[#allocation13 + $0x78] sm:$0xff] }
  0x42   :  { %318 = vmatpush.msrb.mxu0 %v311_v59  ;;  %270 = vmatmul.f32.vlgmr.msra.gmra.mxu2 %v142_v62  ;;  %v354_v38 = vld [vmem:[#allocation11 + $0x80] sm:$0xff]  ;;  %v299_v41 = vld [vmem:[#allocation8 + $0x10] sm:$0xff]  ;;  %v413_v48 = vld [vmem:[#allocation13 + $0x58] sm:$0xff] }
  0x43   :  { %289 = vmatpush.msra.mxu3 %v177_v5  ;;  %434 = vmatpush.msrb.mxu1 %v432_v7  ;;  %v352_v42 = vld [vmem:[#allocation11 + $0x70] sm:$0xff]  ;;  %v414_v43 = vld [vmem:[#allocation13 + $0x60] sm:$0xff]  ;;  %v415_v44 = vld [vmem:[#allocation13 + $0x68] sm:$0xff] }
  0x44   :  { %319 = vmatpush.msrb.mxu0 %v310_v63  ;;  %290 = vmatmul.f32.vlgmr.msra.gmra.mxu3 %v143_v4  ;;  %v298_v45 = vld [vmem:[#allocation8 + $0x8] sm:$0xff]  ;;  %v412_v47 = vld [vmem:[#allocation13 + $0x50] sm:$0xff]  ;;  %v297_v49 = vld [vmem:[#allocation8] sm:$0xff] }
  0x45   :  { %454 = vmatpush.msrb.mxu2 %v433_v8  ;;  %474 = vmatpush.msrb.mxu3 %v368_v10  ;;  %v350_v46 = vld [vmem:[#allocation11 + $0x60] sm:$0xff]  ;;  %v348_v50 = vld [vmem:[#allocation11 + $0x50] sm:$0xff]  ;;  %v411_v53 = vld [vmem:[#allocation13 + $0x48] sm:$0xff] }
  0x46   :  { %320 = vmatpush.msrb.mxu0 %v309_v3  ;;  %435 = vmatpush.msrb.mxu1 %v430_v11  ;;  %v296_v51 = vld [vmem:[#allocation5] sm:$0xff]  ;;  %v410_v52 = vld [vmem:[#allocation13 + $0x40] sm:$0xff]  ;;  %v407_v60 = vld [vmem:[#allocation13 + $0x28] sm:$0xff] }
  0x47   :  { %455 = vmatpush.msrb.mxu2 %v431_v12  ;;  %475 = vmatpush.msrb.mxu3 %v366_v14  ;;  %v400_v54 = vld [vmem:[#allocation11 + $0x1f0] sm:$0xff]  ;;  %v346_v56 = vld [vmem:[#allocation11 + $0x40] sm:$0xff]  ;;  %v409_v57 = vld [vmem:[#allocation13 + $0x38] sm:$0xff] }
  0x48   :  { %321 = vmatpush.msrb.mxu0 %v308_v6  ;;  %436 = vmatpush.msrb.mxu1 %v428_v15  ;;  %v408_v55 = vld [vmem:[#allocation13 + $0x30] sm:$0xff]  ;;  %v398_v58 = vld [vmem:[#allocation11 + $0x1e0] sm:$0xff]  ;;  %v405_v63 = vld [vmem:[#allocation13 + $0x18] sm:$0xff] }
  0x49   :  { %456 = vmatpush.msrb.mxu2 %v429_v16  ;;  %476 = vmatpush.msrb.mxu3 %v364_v18  ;;  %v406_v59 = vld [vmem:[#allocation13 + $0x20] sm:$0xff]  ;;  %v396_v61 = vld [vmem:[#allocation11 + $0x1d0] sm:$0xff]  ;;  %v403_v2 = vld [vmem:[#allocation13 + $0x8] sm:$0xff] }
  0x4a   :  { %322 = vmatpush.msrb.mxu0 %v307_v9  ;;  %437 = vmatpush.msrb.mxu1 %v426_v19  ;;  %v404_v62 = vld [vmem:[#allocation13 + $0x10] sm:$0xff]  ;;  %v394_v0 = vld [vmem:[#allocation11 + $0x1c0] sm:$0xff]  ;;  %v369_v3 = vld [vmem:[#allocation11 + $0xf8] sm:$0xff] }
  0x4b   :  { %457 = vmatpush.msrb.mxu2 %v427_v20  ;;  %477 = vmatpush.msrb.mxu3 %v362_v22  ;;  %v402_v1 = vld [vmem:[#allocation13] sm:$0xff]  ;;  %v401_v4 = vld [vmem:[#allocation11 + $0x1f8] sm:$0xff]  ;;  %v392_v5 = vld [vmem:[#allocation11 + $0x1b0] sm:$0xff] }
  0x4c   :  { %323 = vmatpush.msrb.mxu0 %v306_v13  ;;  %438 = vmatpush.msrb.mxu1 %v424_v23  ;;  %v367_v6 = vld [vmem:[#allocation11 + $0xe8] sm:$0xff]  ;;  %v390_v8 = vld [vmem:[#allocation11 + $0x1a0] sm:$0xff]  ;;  %v365_v9 = vld [vmem:[#allocation11 + $0xd8] sm:$0xff] }
  0x4d   :  { %458 = vmatpush.msrb.mxu2 %v425_v24  ;;  %478 = vmatpush.msrb.mxu3 %v360_v26  ;;  %v399_v7 = vld [vmem:[#allocation11 + $0x1e8] sm:$0xff]  ;;  %v397_v10 = vld [vmem:[#allocation11 + $0x1d8] sm:$0xff]  ;;  %v388_v11 = vld [vmem:[#allocation11 + $0x190] sm:$0xff] }
  0x4e   :  { %324 = vmatpush.msrb.mxu0 %v305_v17  ;;  %439 = vmatpush.msrb.mxu1 %v422_v27  ;;  %v363_v12 = vld [vmem:[#allocation11 + $0xc8] sm:$0xff]  ;;  %v386_v14 = vld [vmem:[#allocation11 + $0x180] sm:$0xff]  ;;  %v361_v15 = vld [vmem:[#allocation11 + $0xb8] sm:$0xff] }
  0x4f   :  { %459 = vmatpush.msrb.mxu2 %v423_v28  ;;  %479 = vmatpush.msrb.mxu3 %v358_v30  ;;  %v395_v13 = vld [vmem:[#allocation11 + $0x1c8] sm:$0xff]  ;;  %v393_v16 = vld [vmem:[#allocation11 + $0x1b8] sm:$0xff]  ;;  %v344_v17 = vld [vmem:[#allocation11 + $0x30] sm:$0xff] }
  0x50   :  { %325 = vmatpush.msrb.mxu0 %v304_v21  ;;  %440 = vmatpush.msrb.mxu1 %v420_v31  ;;  %v384_v18 = vld [vmem:[#allocation11 + $0x170] sm:$0xff]  ;;  %v359_v19 = vld [vmem:[#allocation11 + $0xa8] sm:$0xff]  ;;  %v342_v21 = vld [vmem:[#allocation11 + $0x20] sm:$0xff] }
  0x51   :  { %460 = vmatpush.msrb.mxu2 %v421_v32  ;;  %480 = vmatpush.msrb.mxu3 %v356_v34  ;;  %v391_v20 = vld [vmem:[#allocation11 + $0x1a8] sm:$0xff]  ;;  %v382_v22 = vld [vmem:[#allocation11 + $0x160] sm:$0xff]  ;;  %v357_v23 = vld [vmem:[#allocation11 + $0x98] sm:$0xff] }
  0x52   :  { %326 = vmatpush.msrb.mxu0 %v303_v25  ;;  %441 = vmatpush.msrb.mxu1 %v418_v35  ;;  %v389_v24 = vld [vmem:[#allocation11 + $0x198] sm:$0xff]  ;;  %v340_v25 = vld [vmem:[#allocation11 + $0x10] sm:$0xff]  ;;  %v355_v27 = vld [vmem:[#allocation11 + $0x88] sm:$0xff] }
  0x53   :  { %461 = vmatpush.msrb.mxu2 %v419_v36  ;;  %481 = vmatpush.msrb.mxu3 %v354_v38  ;;  %v380_v26 = vld [vmem:[#allocation11 + $0x150] sm:$0xff]  ;;  %v387_v28 = vld [vmem:[#allocation11 + $0x188] sm:$0xff]  ;;  %v378_v30 = vld [vmem:[#allocation11 + $0x140] sm:$0xff] }
  0x54   :  { %327 = vmatpush.msrb.mxu0 %v302_v29  ;;  %442 = vmatpush.msrb.mxu1 %v416_v39  ;;  %v338_v29 = vld [vmem:[#allocation11] sm:$0xff]  ;;  %v353_v31 = vld [vmem:[#allocation11 + $0x78] sm:$0xff]  ;;  %v376_v34 = vld [vmem:[#allocation11 + $0x130] sm:$0xff] }
  0x55   :  { %462 = vmatpush.msrb.mxu2 %v417_v40  ;;  %482 = vmatpush.msrb.mxu3 %v352_v42  ;;  %v385_v32 = vld [vmem:[#allocation11 + $0x178] sm:$0xff]  ;;  %v351_v35 = vld [vmem:[#allocation11 + $0x68] sm:$0xff]  ;;  %v374_v38 = vld [vmem:[#allocation11 + $0x120] sm:$0xff] }
  0x56   :  { %328 = vmatpush.msrb.mxu0 %v301_v33  ;;  %443 = vmatpush.msrb.mxu1 %v414_v43  ;;  %v208_v33 = vld [vmem:[%s964_s3] sm:$0x3]  ;;  %v383_v36 = vld [vmem:[#allocation11 + $0x168] sm:$0xff]  ;;  %v349_v39 = vld [vmem:[#allocation11 + $0x58] sm:$0xff] }
  0x57   :  { %463 = vmatpush.msrb.mxu2 %v415_v44  ;;  %483 = vmatpush.msrb.mxu3 %v350_v46  ;;  %v381_v40 = vld [vmem:[#allocation11 + $0x158] sm:$0xff]  ;;  %v347_v42 = vld [vmem:[#allocation11 + $0x48] sm:$0xff]  ;;  %v370_v46 = vld [vmem:[#allocation11 + $0x100] sm:$0xff] }
  0x58   :  { %329 = vmatpush.msrb.mxu0 %v300_v37  ;;  %444 = vmatpush.msrb.mxu1 %v412_v47  ;;  %v210_v37 = vperm.slane %v208_v33, 0  ;;  %v379_v43 = vld [vmem:[#allocation11 + $0x148] sm:$0xff]  ;;  %v345_v47 = vld [vmem:[#allocation11 + $0x38] sm:$0xff] }
  0x59   :  { %464 = vmatpush.msrb.mxu2 %v413_v48  ;;  %484 = vmatpush.msrb.mxu3 %v348_v50  ;;  %v377_v48 = vld [vmem:[#allocation11 + $0x138] sm:$0xff]  ;;  %v375_v50 = vld [vmem:[#allocation11 + $0x128] sm:$0xff] }
  0x5a   :  { %330 = vmatpush.msrb.mxu0 %v299_v41  ;;  %445 = vmatpush.msrb.mxu1 %v410_v52  ;;  %v372_v41 = vld [vmem:[#allocation11 + $0x110] sm:$0xff]  ;;  %v341_v52 = vld [vmem:[#allocation11 + $0x18] sm:$0xff] }
  0x5b   :  { %465 = vmatpush.msrb.mxu2 %v411_v53  ;;  %485 = vmatpush.msrb.mxu3 %v346_v56 }
  0x5c   :  { %331 = vmatpush.msrb.mxu0 %v298_v45  ;;  %446 = vmatpush.msrb.mxu1 %v408_v55  ;;  %v339_v55 = vld [vmem:[#allocation11 + $0x8] sm:$0xff] }
  0x5d   :  { %466 = vmatpush.msrb.mxu2 %v409_v57  ;;  %486 = vmatpush.msrb.mxu3 %v344_v17  ;;  %v371_v57 = vld [vmem:[#allocation11 + $0x108] sm:$0xff] }
  0x5e   :  { %332 = vmatpush.msrb.mxu0 %v297_v49  ;;  %447 = vmatpush.msrb.mxu1 %v406_v59  ;;  %v343_v49 = vld [vmem:[#allocation11 + $0x28] sm:$0xff] }
  0x5f   :  { %333 = vmatmul.f32.vlgmr.msrb.gmra.mxu0 %v296_v51  ;;  %467 = vmatpush.msrb.mxu2 %v407_v60 }
  0x60   :  { %494 = vmatpush.msra.mxu0 %v400_v54  ;;  %448 = vmatpush.msrb.mxu1 %v404_v62  ;;  %v373_v54 = vld [vmem:[#allocation11 + $0x118] sm:$0xff] }
  0x61   :  { %468 = vmatpush.msrb.mxu2 %v405_v63  ;;  %487 = vmatpush.msrb.mxu3 %v342_v21 }
  0x62   :  { %495 = vmatpush.msra.mxu0 %v398_v58  ;;  %449 = vmatpush.msrb.mxu1 %v402_v1  ;;  %v211_v58 = vperm.slane %v208_v33, 1 }
  0x63   :  { %469 = vmatpush.msrb.mxu2 %v403_v2  ;;  %488 = vmatpush.msrb.mxu3 %v340_v25 }
  0x64   :  { %496 = vmatpush.msra.mxu0 %v396_v61  ;;  %514 = vmatpush.msra.mxu1 %v369_v3 }
  0x65   :  { %534 = vmatpush.msra.mxu2 %v401_v4  ;;  %489 = vmatpush.msrb.mxu3 %v338_v29 }
  0x66   :  { %497 = vmatpush.msra.mxu0 %v394_v0  ;;  %515 = vmatpush.msra.mxu1 %v367_v6  ;;  %v645_v0 = vld [vmem:[#allocation10] ss:$0 sm:$0xff] }
  0x67   :  { %535 = vmatpush.msra.mxu2 %v399_v7 }
  0x68   :  { %498 = vmatpush.msra.mxu0 %v392_v5  ;;  %516 = vmatpush.msra.mxu1 %v365_v9 }
  0x69   :  { %536 = vmatpush.msra.mxu2 %v397_v10  ;;  %v554_v10 = vld [vmem:[%s969_s8] sm:$0x3] }
  0x6a   :  { %499 = vmatpush.msra.mxu0 %v390_v8  ;;  %517 = vmatpush.msra.mxu1 %v363_v12 }
  0x6b   :  { %537 = vmatpush.msra.mxu2 %v395_v13  ;;  %v556_v13 = vperm.slane %v554_v10, 0 }
  0x6c   :  { %500 = vmatpush.msra.mxu0 %v388_v11  ;;  %518 = vmatpush.msra.mxu1 %v361_v15 }
  0x6d   :  { %538 = vmatpush.msra.mxu2 %v393_v16 }
  0x6e   :  { %501 = vmatpush.msra.mxu0 %v386_v14  ;;  %519 = vmatpush.msra.mxu1 %v359_v19  ;;  %v557_v14 = vperm.slane %v554_v10, 1 }
  0x6f   :  { %539 = vmatpush.msra.mxu2 %v391_v20  ;;  %v863_v20 = vmov 256.0  }
  0x70   :  { %502 = vmatpush.msra.mxu0 %v384_v18  ;;  %520 = vmatpush.msra.mxu1 %v357_v23  ;;  %646 = vrcp.f32 %v863_v20 }
  0x71   :  { %540 = vmatpush.msra.mxu2 %v389_v24 }
  0x72   :  { %503 = vmatpush.msra.mxu0 %v382_v22  ;;  %521 = vmatpush.msra.mxu1 %v355_v27 }
  0x73   :  { %541 = vmatpush.msra.mxu2 %v387_v28 }
  0x74   :  { %504 = vmatpush.msra.mxu0 %v380_v26  ;;  %522 = vmatpush.msra.mxu1 %v353_v31 }
  0x75   :  { %542 = vmatpush.msra.mxu2 %v385_v32 }
  0x76   :  { %505 = vmatpush.msra.mxu0 %v378_v30  ;;  %523 = vmatpush.msra.mxu1 %v351_v35  ;;  %v647_v21 = vpop.eup %646 }
  0x77   :  { %543 = vmatpush.msra.mxu2 %v383_v36  ;;  %v566_v22 = vmul.f32 256.0, %v647_v21  ;;  %vm570_vm0 = vweird.f32 %v647_v21 }
  0x78   :  { %506 = vmatpush.msra.mxu0 %v376_v34  ;;  %524 = vmatpush.msra.mxu1 %v349_v39 }
  0x79   :  { %544 = vmatpush.msra.mxu2 %v381_v40  ;;  %v567_v23 = vsub.f32 1.0, %v566_v22 }
  0x7a   :  { %507 = vmatpush.msra.mxu0 %v374_v38  ;;  %525 = vmatpush.msra.mxu1 %v347_v42  ;;  %v594_v42 = vld [vmem:[%s970_s9] sm:$0x3] }
  0x7b   :  { %545 = vmatpush.msra.mxu2 %v379_v43  ;;  %v568_v24 = vmul.f32 %v647_v21, %v567_v23 }
  0x7c   :  { %508 = vmatpush.msra.mxu0 %v372_v41  ;;  %526 = vmatpush.msra.mxu1 %v345_v47 }
  0x7d   :  { %546 = vmatpush.msra.mxu2 %v377_v48  ;;  %v569_v25 = vadd.f32 %v647_v21, %v568_v24 }
  0x7e   :  { %509 = vmatpush.msra.mxu0 %v370_v46  ;;  %527 = vmatpush.msra.mxu1 %v343_v49  ;;  %v597_v46 = vperm.slane %v594_v42, 1 }
  0x7f   :  { %547 = vmatpush.msra.mxu2 %v375_v50  ;;  %v571_v26 = vsel %vm570_vm0, %v647_v21, %v569_v25 }
  0x80   :  { %528 = vmatpush.msra.mxu1 %v341_v52 }
  0x81   :  { %548 = vmatpush.msra.mxu2 %v373_v54 }
  0x82   :  { %529 = vmatpush.msra.mxu1 %v339_v55 }
  0x83   :  { %549 = vmatpush.msra.mxu2 %v371_v57 }
  0xbc   :  { %v231_v44 = vpop.f32.mrf.mxu0 }
  0xbd   :  { %v232_v45 = vadd.f32 %v231_v44, %v210_v37  ;;  %v602_v44 = vld [vmem:[%s971_s10] sm:$0x3] }
  0xbe   :  { %v251_v51 = vpop.f32.mrf.mxu1  ;;  %v604_v50 = vperm.slane %v602_v44, 0 }
  0xbf   :  { %v252_v53 = vadd.f32 %v251_v51, %v232_v45  ;;  %v596_v45 = vperm.slane %v594_v42, 0  ;;  %v605_v51 = vperm.slane %v602_v44, 1 }
  0xc1   :  { %v294_v56 = vmax.f32 %v252_v53, 0.0 }
  0xc3   :  { %490 = vmatmul.f32.vlgmr.msrb.gmra.mxu3 %v294_v56 }
  0xc5   :  { %v271_v59 = vpop.f32.mrf.mxu2 }
  0xc6   :  { %v272_v60 = vadd.f32 %v271_v59, %v211_v58 }
  0xc7   :  { %v291_v61 = vpop.f32.mrf.mxu3 }
  0xc8   :  { %v292_v62 = vadd.f32 %v291_v61, %v272_v60 }
  0xca   :  { %v295_v63 = vmax.f32 %v292_v62, 0.0 }
  0xcc   :  { %510 = vmatmul.f32.vlgmr.msra.gmra.mxu0 %v295_v63 }
  0xdc   :  { %v334_v1 = vpop.f32.mrf.mxu0 }
  0xdd   :  { %v335_v2 = vadd.f32 %v645_v0, %v334_v1 }
  0xdf   :  { %v337_v3 = vmax.f32 %v335_v2, 0.0 }
  0xe1   :  { %450 = vmatmul.f32.vlgmr.msrb.gmra.mxu1 %v337_v3  ;;  %470 = vmatmul.f32.vlgmr.msrb.gmra.mxu2 %v337_v3 }
  0xe9   :  { %530 = vmatmul.f32.vlgmr.msra.gmra.mxu1 %v294_v56  ;;  %550 = vmatmul.f32.vlgmr.msra.gmra.mxu2 %v295_v63 }
 0x146   :  { %v491_v5 = vpop.f32.mrf.mxu3 }
 0x149   :  { %v511_v8 = vpop.f32.mrf.mxu0 }
 0x15e   :  { %v451_v4 = vpop.f32.mrf.mxu1 }
 0x15f   :  { %v492_v7 = vadd.f32 %v491_v5, %v451_v4 }
 0x161   :  { %v512_v11 = vadd.f32 %v511_v8, %v492_v7 }
 0x163   :  { %v560_v17 = vadd.f32 %v556_v13, %v512_v11 }
 0x164   :  { %v471_v6 = vpop.f32.mrf.mxu2 }
 0x166   :  { %v531_v9 = vpop.f32.mrf.mxu1 }
 0x167   :  { %v532_v12 = vadd.f32 %v531_v9, %v471_v6 }
 0x16c   :  { %v551_v15 = vpop.f32.mrf.mxu2 }
 0x16d   :  { %v552_v16 = vadd.f32 %v551_v15, %v532_v12 }
 0x16f   :  { %v561_v18 = vadd.f32 %v557_v14, %v552_v16 }
 0x171   :  { %v562_v19 = vadd.f32 %v561_v18, %v560_v17 }
 0x173   :  { %563 = vadd.xlane.f32.xlu0 %v562_v19 }
 0x1e6   :  { %v564_v27 = vpop.xlane.xlu0 %563 }
 0x1e7   :  { %v572_v28 = vmul.f32 %v571_v26, %v564_v27 }
 0x1e9   :  { %v573_v29 = vsub.f32 %v560_v17, %v572_v28  ;;  %v574_v30 = vsub.f32 %v561_v18, %v572_v28 }
 0x1eb   :  { %v575_v31 = vmul.f32 %v573_v29, %v573_v29  ;;  %v576_v32 = vmul.f32 %v574_v30, %v574_v30 }
 0x1ed   :  { %v577_v33 = vadd.f32 %v576_v32, %v575_v31 }
 0x1ef   :  { %578 = vadd.xlane.f32.xlu0 %v577_v33 }
 0x262   :  { %v579_v34 = vpop.xlane.xlu0 %578 }
 0x263   :  { %v580_v35 = vmul.f32 %v579_v34, %v571_v26 }
 0x265   :  { %v581_v36 = vadd.f32 1e-05, %v580_v35 }
 0x267   :  { %648 = vrsqrt.f32 %v581_v36  ;;  %vm588_vm2 = vweird.f32 %v581_v36 }
 0x26d   :  { %v649_v37 = vpop.eup %648 }
 0x26e   :  { %v583_v38 = vmul.f32 %v649_v37, %v581_v36  ;;  %vm589_vm1 = vweird.f32 %v649_v37 }
 0x26f   :  { %vm590_vm3 = vmor %vm588_vm2, %vm589_vm1 }
 0x270   :  { %v584_v39 = vmul.f32 %v649_v37, %v583_v38 }
 0x272   :  { %v585_v40 = vmul.f32 0.5, %v584_v39 }
 0x274   :  { %v586_v41 = vsub.f32 1.5, %v585_v40 }
 0x276   :  { %v587_v43 = vmul.f32 %v649_v37, %v586_v41 }
 0x278   :  { %v591_v47 = vsel %vm590_vm3, %v649_v37, %v587_v43 }
 0x279   :  { %v592_v48 = vmul.f32 %v591_v47, %v573_v29  ;;  %v593_v49 = vmul.f32 %v591_v47, %v574_v30 }
 0x27b   :  { %v600_v52 = vmul.f32 %v596_v45, %v592_v48  ;;  %v601_v53 = vmul.f32 %v597_v46, %v593_v49 }
 0x27d   :  { %v608_v54 = vadd.f32 %v604_v50, %v600_v52  ;;  %v609_v55 = vadd.f32 %v605_v51, %v601_v53 }
 0x27f   :  { %610 = vst [vmem:[#allocation14] sm:$0xff] %v608_v54 }
 0x280   :  { %611 = vst [vmem:[#allocation14 + $0x8] sm:$0xff] %v609_v55 }
 0x281   :  { %622 = dma.vmem_to_hbm [thread:$0]  %s618_s16, 256, %s620_s18, [#allocation4]  }
 0x282   :  { %850 = dma.done.wait [#allocation4], 256  }
 0x283   :  { %851 = vsyncadd [#allocation4], 4294967040 }
 0x284   :  { %627 = vsyncpa [#allocation3], 1 }
 0x285   :  { %628 = vsyncpa [#allocation6], 1 }
 0x286   :  { %629 = vsyncpa [#allocation9], 1 }
 0x287   :  { %630 = vsyncpa [#allocation12], 1 }
 0x288   :  { %631 = vsyncpa [#allocation4], 1 }

</bundles_post_ra>
